<compile_context>
chip_gen: v5e
topology: v5e:2x2
jax: 0.10.0
libtpu: 0.0.40
codegen_flags: <defaults>
</compile_context>

<pallas_src>
import functools
import math

import jax
import jax.numpy as jnp
from jax.experimental import pallas as pl
from jax.experimental.pallas import tpu as pltpu


def _round_up(x, m):
    return ((x + m - 1) // m) * m


def _leaky_relu(h, slope):
    # `slope` is a static Python float.  For the standard 0 <= slope <= 1 case
    # max(h, slope*h) == leaky_relu(h, slope) and drops a compare+select.
    if 0.0 <= slope <= 1.0:
        return jnp.maximum(h, h * slope)
    return jnp.where(h > 0, h, h * slope)


def _mlp_kernel(x_ref, w1_ref, b1_ref, w2_ref, b2_ref, w3_ref, b3_ref, o_ref,
                *, slope):
    # Layer 1: cast the f32 input tile to bf16 only at the MXU input,
    # accumulate in f32 (preferred_element_type).
    xb = x_ref[...].astype(w1_ref.dtype)
    h = jnp.dot(xb, w1_ref[...], preferred_element_type=jnp.float32)
    h = _leaky_relu(h + b1_ref[...], slope)

    # Layer 2.
    h = jnp.dot(h.astype(w2_ref.dtype), w2_ref[...],
                preferred_element_type=jnp.float32)
    h = _leaky_relu(h + b2_ref[...], slope)

    # Layer 3: logits, no activation.
    h = jnp.dot(h.astype(w3_ref.dtype), w3_ref[...],
                preferred_element_type=jnp.float32)
    o_ref[...] = (h + b3_ref[...]).astype(o_ref.dtype)


def prepare_params(params, d_in=500):
    """One-time preprocessing (outside the hot path): transpose PyTorch-layout
    weights, zero-pad output features to lane multiples (128), cast matmul
    operands to bf16; biases stay f32.  w1 keeps an unpadded K (= d_in) so the
    raw f32 input can be fed to the kernel with no wrapper-side padding."""
    w1, b1 = params["w1"], params["b1"]   # (h, 500), (h,)
    w2, b2 = params["w2"], params["b2"]   # (h, h),   (h,)
    w3, b3 = params["w3"], params["b3"]   # (2, h),   (2,)
    h_dim = w1.shape[0]
    d_out = w3.shape[0]

    Hp = _round_up(h_dim, 128)
    Op = _round_up(d_out, 128)

    bf16, f32 = jnp.bfloat16, jnp.float32

    w1t = jnp.zeros((d_in, Hp), bf16).at[:, :h_dim].set(w1.T.astype(bf16))
    w2t = jnp.zeros((Hp, Hp), bf16).at[:h_dim, :h_dim].set(w2.T.astype(bf16))
    w3t = jnp.zeros((Hp, Op), bf16).at[:h_dim, :d_out].set(w3.T.astype(bf16))

    b1p = jnp.zeros((1, Hp), f32).at[0, :h_dim].set(b1.astype(f32))
    b2p = jnp.zeros((1, Hp), f32).at[0, :h_dim].set(b2.astype(f32))
    b3p = jnp.zeros((1, Op), f32).at[0, :d_out].set(b3.astype(f32))

    return {
        "w1t": jax.device_put(w1t), "b1p": jax.device_put(b1p),
        "w2t": jax.device_put(w2t), "b2p": jax.device_put(b2p),
        "w3t": jax.device_put(w3t), "b3p": jax.device_put(b3p),
        "d_in": d_in, "d_out": d_out,
    }


def _pick_tile_b(B, cap=2048, granule=8):
    """Batch tile policy:
      * tiny batch -> one full-extent tile (block == full dim, always legal);
      * otherwise split into at least 2 grid steps (v7x megacore gets both
        TensorCores busy) while capping the tile at `cap` rows so per-step
        overhead is amortized and per-step VMEM stays bounded;
      * the grid is cdiv(B, tile) -> at most one partial (masked) last tile,
        never a near-2x batch padding."""
    if B <= 2 * granule:
        return B                                   # full-dim block
    Bg = _round_up(B, granule)
    if Bg <= 2 * cap:
        return min(cap, _round_up((Bg + 1) // 2, granule))   # exactly 2 steps
    return cap


def discriminator_forward(x, prepped, slope):
    """x: (B, 500) float32.  prepped: output of prepare_params().
    Returns logits (B, 2) float32."""
    w1t, b1p = prepped["w1t"], prepped["b1p"]
    w2t, b2p = prepped["w2t"], prepped["b2p"]
    w3t, b3p = prepped["w3t"], prepped["b3p"]
    d_in, d_out = prepped["d_in"], prepped["d_out"]

    B = x.shape[0]
    assert x.shape[1] == d_in, (x.shape, d_in)
    Hp = w1t.shape[1]
    Op = w3t.shape[1]

    tile_b = _pick_tile_b(B)
    grid = (pl.cdiv(B, tile_b),)

    kernel = functools.partial(_mlp_kernel, slope=float(slope))

    out_p = pl.pallas_call(
        kernel,
        out_shape=jax.ShapeDtypeStruct((B, Op), jnp.float32),
        grid=grid,
        in_specs=[
            pl.BlockSpec((tile_b, d_in), lambda i: (i, 0)),   # x tile (f32)
            pl.BlockSpec((d_in, Hp), lambda i: (0, 0)),       # w1 (resident)
            pl.BlockSpec((1, Hp), lambda i: (0, 0)),          # b1 (resident)
            pl.BlockSpec((Hp, Hp), lambda i: (0, 0)),         # w2 (resident)
            pl.BlockSpec((1, Hp), lambda i: (0, 0)),          # b2 (resident)
            pl.BlockSpec((Hp, Op), lambda i: (0, 0)),         # w3 (resident)
            pl.BlockSpec((1, Op), lambda i: (0, 0)),          # b3 (resident)
        ],
        out_specs=pl.BlockSpec((tile_b, Op), lambda i: (i, 0)),
        compiler_params=pltpu.CompilerParams(
            dimension_semantics=("parallel",),
            vmem_limit_bytes=48 * 1024 * 1024),
    )(x, w1t, b1p, w2t, b2p, w3t, b3p)

    # Only the first d_out (=2) lanes of the lane-padded output are real.
    return out_p[:, :d_out]


def init_params(key, h=500, d_in=500, d_out=2):
    """Deterministic init mirroring the PyTorch module: kaiming_normal_ on
    weights (fan_in, gain=sqrt(2)); default Linear bias init
    U(-1/sqrt(fan_in), 1/sqrt(fan_in))."""
    ks = jax.random.split(key, 6)

    def kaiming(k, shape):
        fan_in = shape[1]
        std = math.sqrt(2.0 / fan_in)
        return std * jax.random.normal(k, shape, dtype=jnp.float32)

    def bias(k, out_f, fan_in):
        bound = 1.0 / math.sqrt(fan_in)
        return jax.random.uniform(k, (out_f,), jnp.float32, -bound, bound)

    return {
        "w1": kaiming(ks[0], (h, d_in)),     "b1": bias(ks[1], h, d_in),
        "w2": kaiming(ks[2], (h, h)),        "b2": bias(ks[3], h, h),
        "w3": kaiming(ks[4], (d_out, h)),    "b3": bias(ks[5], d_out, h),
    }


def reference_forward_f32(x, params, slope):
    """Plain-JAX f32 reference (module semantics)."""
    def lrelu(v):
        return jnp.where(v > 0, v, slope * v)
    h = lrelu(x @ params["w1"].T + params["b1"])
    h = lrelu(h @ params["w2"].T + params["b2"])
    return h @ params["w3"].T + params["b3"]


def reference_forward_bf16(x, params, slope):
    """Plain-JAX reference mirroring the kernel's bf16-operand /
    f32-accumulate matmuls (for tight numerical comparison)."""
    bf16, f32 = jnp.bfloat16, jnp.float32

    def lrelu(v):
        return jnp.where(v > 0, v, slope * v)

    def lin(a, w, b):
        return jnp.dot(a.astype(bf16), w.T.astype(bf16),
                       preferred_element_type=f32) + b.astype(f32)

    h = lrelu(lin(x, params["w1"], params["b1"]))
    h = lrelu(lin(h, params["w2"], params["b2"]))
    return lin(h, params["w3"], params["b3"])


if __name__ == "__main__":
    key = jax.random.PRNGKey(0)
    k_param, k_x = jax.random.split(key)

    h_dim = 500          # module default h=500
    d_in = 500           # l1 input features fixed at 500
    batch = 4            # small batch
    slope = 0.2          # args.slope (synthetic, deterministic)

    params = init_params(k_param, h=h_dim, d_in=d_in)
    prepped = prepare_params(params, d_in=d_in)   # one-time, out of hot path
    x = jax.random.normal(k_x, (batch, d_in), dtype=jnp.float32)

    out = discriminator_forward(x, prepped, slope)
    out = jax.block_until_ready(out)
    assert out.shape == (batch, 2), out.shape

    # Tight check vs a bf16-operand / f32-accumulate reference (same math).
    ref_bf16 = reference_forward_bf16(x, params, slope)
    assert jnp.allclose(out, ref_bf16, atol=2e-3, rtol=2e-3), (
        "mismatch vs bf16-emulated reference")

    # Loose check vs the pure-f32 module reference (bf16 operand rounding).
    ref_f32 = reference_forward_f32(x, params, slope)
    assert jnp.allclose(out, ref_f32, atol=1e-1, rtol=1e-1), (
        "mismatch vs f32 reference")

    print("KERNEL_OK")
</pallas_src>

<mosaic_0001>
module attributes {stable_mosaic.version = 11 : i64} {
  func.func @_mlp_kernel(%arg0: i32, %arg1: memref<4x500xf32, #tpu.memory_space<vmem>>, %arg2: memref<500x512xbf16, #tpu.memory_space<vmem>>, %arg3: memref<1x512xf32, #tpu.memory_space<vmem>>, %arg4: memref<512x512xbf16, #tpu.memory_space<vmem>>, %arg5: memref<1x512xf32, #tpu.memory_space<vmem>>, %arg6: memref<512x128xbf16, #tpu.memory_space<vmem>>, %arg7: memref<1x128xf32, #tpu.memory_space<vmem>>, %arg8: memref<4x128xf32, #tpu.memory_space<vmem>>) attributes {dimension_semantics = [#tpu.dimension_semantics<parallel>], iteration_bounds = array<i64: 1>, scalar_prefetch = 0 : i64, scratch_operands = 0 : i64, tpu.core_type = #tpu.core_type<tc>, window_params = [{transform_indices = @transform_0, window_bounds = array<i64: 4, 500>}, {pipeline_mode = #tpu.pipeline_mode<synchronous>, transform_indices = @transform_1, window_bounds = array<i64: 500, 512>}, {pipeline_mode = #tpu.pipeline_mode<synchronous>, transform_indices = @transform_2, window_bounds = array<i64: 1, 512>}, {pipeline_mode = #tpu.pipeline_mode<synchronous>, transform_indices = @transform_3, window_bounds = array<i64: 512, 512>}, {pipeline_mode = #tpu.pipeline_mode<synchronous>, transform_indices = @transform_4, window_bounds = array<i64: 1, 512>}, {pipeline_mode = #tpu.pipeline_mode<synchronous>, transform_indices = @transform_5, window_bounds = array<i64: 512, 128>}, {pipeline_mode = #tpu.pipeline_mode<synchronous>, transform_indices = @transform_6, window_bounds = array<i64: 1, 128>}, {transform_indices = @transform_7, window_bounds = array<i64: 4, 128>}]} {
    %c0 = arith.constant 0 : index
    %c0_0 = arith.constant 0 : index
    %0 = vector.load %arg1[%c0, %c0_0] : memref<4x500xf32, #tpu.memory_space<vmem>>, vector<4x500xf32>
    %1 = arith.truncf %0 : vector<4x500xf32> to vector<4x500xbf16>
    %c0_1 = arith.constant 0 : index
    %c0_2 = arith.constant 0 : index
    %2 = vector.load %arg2[%c0_1, %c0_2] : memref<500x512xbf16, #tpu.memory_space<vmem>>, vector<500x512xbf16>
    %cst = arith.constant dense<0.000000e+00> : vector<4x512xf32>
    %3 = tpu.matmul %1, %2, %cst {dimension_numbers = #tpu.dot_dimension_numbers<[1], [0], [0], [1], [0, 0, 1, 1], [], []>} : vector<4x500xbf16>, vector<500x512xbf16>, vector<4x512xf32> -> vector<4x512xf32>
    %c0_3 = arith.constant 0 : index
    %c0_4 = arith.constant 0 : index
    %4 = vector.load %arg3[%c0_3, %c0_4] : memref<1x512xf32, #tpu.memory_space<vmem>>, vector<1x512xf32>
    %5 = vector.broadcast %4 : vector<1x512xf32> to vector<4x512xf32>
    %6 = arith.addf %3, %5 : vector<4x512xf32>
    %cst_5 = arith.constant 2.000000e-01 : f32
    %7 = vector.broadcast %cst_5 : f32 to vector<4x512xf32>
    %8 = arith.mulf %6, %7 : vector<4x512xf32>
    %9 = arith.maximumf %6, %8 : vector<4x512xf32>
    %10 = arith.truncf %9 : vector<4x512xf32> to vector<4x512xbf16>
    %c0_6 = arith.constant 0 : index
    %c0_7 = arith.constant 0 : index
    %11 = vector.load %arg4[%c0_6, %c0_7] : memref<512x512xbf16, #tpu.memory_space<vmem>>, vector<512x512xbf16>
    %cst_8 = arith.constant dense<0.000000e+00> : vector<4x512xf32>
    %12 = tpu.matmul %10, %11, %cst_8 {dimension_numbers = #tpu.dot_dimension_numbers<[1], [0], [0], [1], [0, 0, 1, 1], [], []>} : vector<4x512xbf16>, vector<512x512xbf16>, vector<4x512xf32> -> vector<4x512xf32>
    %c0_9 = arith.constant 0 : index
    %c0_10 = arith.constant 0 : index
    %13 = vector.load %arg5[%c0_9, %c0_10] : memref<1x512xf32, #tpu.memory_space<vmem>>, vector<1x512xf32>
    %14 = vector.broadcast %13 : vector<1x512xf32> to vector<4x512xf32>
    %15 = arith.addf %12, %14 : vector<4x512xf32>
    %cst_11 = arith.constant 2.000000e-01 : f32
    %16 = vector.broadcast %cst_11 : f32 to vector<4x512xf32>
    %17 = arith.mulf %15, %16 : vector<4x512xf32>
    %18 = arith.maximumf %15, %17 : vector<4x512xf32>
    %19 = arith.truncf %18 : vector<4x512xf32> to vector<4x512xbf16>
    %c0_12 = arith.constant 0 : index
    %c0_13 = arith.constant 0 : index
    %20 = vector.load %arg6[%c0_12, %c0_13] : memref<512x128xbf16, #tpu.memory_space<vmem>>, vector<512x128xbf16>
    %cst_14 = arith.constant dense<0.000000e+00> : vector<4x128xf32>
    %21 = tpu.matmul %19, %20, %cst_14 {dimension_numbers = #tpu.dot_dimension_numbers<[1], [0], [0], [1], [0, 0, 1, 1], [], []>} : vector<4x512xbf16>, vector<512x128xbf16>, vector<4x128xf32> -> vector<4x128xf32>
    %c0_15 = arith.constant 0 : index
    %c0_16 = arith.constant 0 : index
    %22 = vector.load %arg7[%c0_15, %c0_16] : memref<1x128xf32, #tpu.memory_space<vmem>>, vector<1x128xf32>
    %23 = vector.broadcast %22 : vector<1x128xf32> to vector<4x128xf32>
    %24 = arith.addf %21, %23 : vector<4x128xf32>
    %c0_17 = arith.constant 0 : index
    %c0_18 = arith.constant 0 : index
    %25 = vector.load %arg8[%c0_17, %c0_18] : memref<4x128xf32, #tpu.memory_space<vmem>>, vector<4x128xf32>
    tpu.vector_store %arg8[%c0_17, %c0_18], %24 {strides = array<i32>} : memref<4x128xf32, #tpu.memory_space<vmem>>, vector<4x128xf32>,
    return
  }
  func.func @transform_0(%arg0: i32) -> (i32, i32) {
    %c0_i32 = arith.constant 0 : i32
    %c0_i32_0 = arith.constant 0 : i32
    return %arg0, %c0_i32 : i32, i32
  }
  func.func @transform_1(%arg0: i32) -> (i32, i32) {
    %c0_i32 = arith.constant 0 : i32
    %c0_i32_0 = arith.constant 0 : i32
    %c0_i32_1 = arith.constant 0 : i32
    return %c0_i32, %c0_i32_0 : i32, i32
  }
  func.func @transform_2(%arg0: i32) -> (i32, i32) {
    %c0_i32 = arith.constant 0 : i32
    %c0_i32_0 = arith.constant 0 : i32
    %c0_i32_1 = arith.constant 0 : i32
    return %c0_i32, %c0_i32_0 : i32, i32
  }
  func.func @transform_3(%arg0: i32) -> (i32, i32) {
    %c0_i32 = arith.constant 0 : i32
    %c0_i32_0 = arith.constant 0 : i32
    %c0_i32_1 = arith.constant 0 : i32
    return %c0_i32, %c0_i32_0 : i32, i32
  }
  func.func @transform_4(%arg0: i32) -> (i32, i32) {
    %c0_i32 = arith.constant 0 : i32
    %c0_i32_0 = arith.constant 0 : i32
    %c0_i32_1 = arith.constant 0 : i32
    return %c0_i32, %c0_i32_0 : i32, i32
  }
  func.func @transform_5(%arg0: i32) -> (i32, i32) {
    %c0_i32 = arith.constant 0 : i32
    %c0_i32_0 = arith.constant 0 : i32
    %c0_i32_1 = arith.constant 0 : i32
    return %c0_i32, %c0_i32_0 : i32, i32
  }
  func.func @transform_6(%arg0: i32) -> (i32, i32) {
    %c0_i32 = arith.constant 0 : i32
    %c0_i32_0 = arith.constant 0 : i32
    %c0_i32_1 = arith.constant 0 : i32
    return %c0_i32, %c0_i32_0 : i32, i32
  }
  func.func @transform_7(%arg0: i32) -> (i32, i32) {
    %c0_i32 = arith.constant 0 : i32
    %c0_i32_0 = arith.constant 0 : i32
    return %arg0, %c0_i32 : i32, i32
  }
}

</mosaic_0001>

<bundles_post_ra>
// kernel: tpu_custom_call.1
= control target key start
LH: loop header
LB: loop body
LE: loop exit
PB: predicated region body
PF: predicated region fallthrough
CT: control target
= control target key end

     0   :  { %12 = vsyncpa [#allocation3], 0  ;;  %s4251_s0 = inlined_call_operand.hbm [shape: f32[4,500], index: 0, kind: input, shape index: {}]   ;;  %s4252_s1 = inlined_call_operand.hbm [shape: bf16[500,512], index: 1, kind: input, shape index: {}]   ;;  %s4253_s2 = inlined_call_operand.hbm [shape: f32[1,512], index: 2, kind: input, shape index: {}]   ;;  %s4254_s3 = inlined_call_operand.hbm [shape: bf16[512,512], index: 3, kind: input, shape index: {}]   ;;  %s4255_s4 = inlined_call_operand.hbm [shape: f32[1,512], index: 4, kind: input, shape index: {}]   ;;  %s4256_s5 = inlined_call_operand.hbm [shape: bf16[512,128], index: 5, kind: input, shape index: {}]   ;;  %s4257_s6 = inlined_call_operand.vmem [shape: f32[1,128], index: 6, kind: input, shape index: {}]   ;;  %s4258_s7 = inlined_call_operand.hbm [shape: f32[4,128], index: 7, kind: output, shape index: {}]  }
   0x1   :  { %13 = vsyncpa [#allocation6], 0 }
   0x2   :  { %14 = vsyncpa [#allocation9], 0 }
   0x3   :  { %15 = vsyncpa [#allocation12], 0  ;;  %s32_s26 = sshll.u32 %s4252_s1, 4  ;;  %s33_s26 = int_to_ptr.hbm [resolvable:$true] %s32_s26 }
   0x4   :  { %16 = vsyncpa [#allocation4], 0  ;;  %s4082_s27 = smov [#allocation5]   ;;  %s56_s8 = sshll.u32 %s4254_s3, 4  ;;  %s57_s8 = int_to_ptr.hbm [resolvable:$true] %s56_s8 }
   0x5   :  { %s34_s28 = sshll.u32 %s4082_s27, 4  ;;  %s4083_s9 = smov 256   ;;  %s35_s28 = int_to_ptr.vmem [resolvable:$true] %s34_s28 }
   0x6   :  { %s4084_s10 = smov 16   ;;  %s4085_s11 = smov [#allocation8]  }
   0x7   :  { %40 = dma.hbm_to_vmem [thread:$0]  %s33_s26, 16128, %s35_s28, [#allocation6], %s4083_s9, %s4083_s9, %s4084_s10  }
   0x8   :  { %s58_s12 = sshll.u32 %s4085_s11, 4  ;;  %s22_s15 = sshll.u32 %s4251_s0, 4  ;;  %s59_s12 = int_to_ptr.vmem [resolvable:$true] %s58_s12  ;;  %s23_s15 = int_to_ptr.hbm [resolvable:$true] %s22_s15 }
   0x9   :  { %64 = dma.hbm_to_vmem [thread:$0]  %s57_s8, 16384, %s59_s12, [#allocation9], %s4083_s9, %s4083_s9, %s4084_s10  }
   0xa   :  { %s46_s17 = sshll.u32 %s4253_s2, 4  ;;  %s4086_s18 = smov [#allocation2]   ;;  %s47_s17 = int_to_ptr.hbm [resolvable:$true] %s46_s17 }
   0xb   :  { %s24_s19 = sshll.u32 %s4086_s18, 4  ;;  %s4087_s3 = smov [#allocation7]   ;;  %s25_s19 = int_to_ptr.vmem [resolvable:$true] %s24_s19 }
   0xc   :  { %27 = dma.hbm_to_vmem [thread:$0]  %s23_s15, 256, %s25_s19, [#allocation3]  }
   0xd   :  { %s48_s20 = sshll.u32 %s4087_s3, 4  ;;  %s70_s23 = sshll.u32 %s4255_s4, 4  ;;  %s49_s20 = int_to_ptr.vmem [resolvable:$true] %s48_s20  ;;  %s71_s23 = int_to_ptr.hbm [resolvable:$true] %s70_s23 }
   0xe   :  { %51 = dma.hbm_to_vmem [thread:$0]  %s47_s17, 64, %s49_s20, [#allocation6]  }
   0xf   :  { %s80_s25 = sshll.u32 %s4256_s5, 4  ;;  %s4088_s26 = smov [#allocation10]   ;;  %s81_s25 = int_to_ptr.hbm [resolvable:$true] %s80_s25 }
  0x10   :  { %s72_s2 = sshll.u32 %s4088_s26, 4  ;;  %s4089_s27 = smov [#allocation11]   ;;  %s73_s2 = int_to_ptr.vmem [resolvable:$true] %s72_s2 }
  0x11   :  { %75 = dma.hbm_to_vmem [thread:$0]  %s71_s23, 64, %s73_s2, [#allocation9]  }
  0x12   :  { %s82_s28 = sshll.u32 %s4089_s27, 4  ;;  %s4090_s29 = smov 64   ;;  %s83_s28 = int_to_ptr.vmem [resolvable:$true] %s82_s28 }
  0x13   :  { %s4091_s30 = smov 4  }
  0x14   :  { %88 = dma.hbm_to_vmem [thread:$0]  %s81_s25, 4096, %s83_s28, [#allocation12], %s4090_s29, %s4090_s29, %s4091_s30  }
  0x15   :  { %4072 = dma.done.wait [#allocation3], 256  }
  0x16   :  { %4073 = vsyncadd [#allocation3], 4294967040 }
  0x17   :  { %4074 = dma.done.wait [#allocation6], 16192  }
  0x18   :  { %4075 = vsyncadd [#allocation6], 4294951104 }
  0x19   :  { %4076 = dma.done.wait [#allocation9], 16448  }
  0x1a   :  { %4077 = vsyncadd [#allocation9], 4294950848 }
  0x1b   :  { %4078 = dma.done.wait [#allocation12], 4096  }
  0x1c   :  { %4079 = vsyncadd [#allocation12], 4294963200  ;;  %vm904_vm0 = vcmask 1041408   ;;  %v2582_v0 = vld [vmem:[#allocation5 + $0xe0] sm:$0xf]  ;;  %vm900_vm1 = vcmask 949248  }
  0x1d   :  { %v3638_v1 = vld [vmem:[#allocation5 + $0xec] sm:$0xf0]  ;;  %v2710_v2 = vld [vmem:[#allocation5 + $0x1e0] sm:$0xf]  ;;  %s4092_s8 = smov [#allocation13]   ;;  %s2455_s12 = sshll.u32 %s4258_s7, 4  ;;  %s2456_s12 = int_to_ptr.hbm [resolvable:$true] %s2455_s12 }
  0x1e   :  { %v2583_v3 = vor.u32 %v3638_v1, %v2582_v0  ;;  %v3670_v4 = vld [vmem:[#allocation5 + $0x1ec] sm:$0xf0]  ;;  %v2838_v5 = vld [vmem:[#allocation5 + $0x2e0] sm:$0xf]  ;;  %s2453_s9 = sshll.u32 %s4092_s8, 4  ;;  %s2454_s9 = int_to_ptr.vmem [resolvable:$true] %s2453_s9 }
  0x1f   :  { %v3702_v6 = vld [vmem:[#allocation5 + $0x2ec] sm:$0xf0]  ;;  %v2711_v7 = vor.u32 %v3670_v4, %v2710_v2  ;;  %v4151_v9 = vld [vmem:[#allocation5 + $0x3e0] sm:$0x33] }
  0x20   :  { %v2839_v8 = vor.u32 %v3702_v6, %v2838_v5  ;;  %v2566_v10 = vld [vmem:[#allocation5 + $0xc0] sm:$0xf]  ;;  %v3634_v11 = vld [vmem:[#allocation5 + $0xcc] sm:$0xf0]  ;;  %917 = vmatpush.bf16.msra.mxu0 %v2583_v3  ;;  %v644_v12 = vunpack.c.l.b16 %v4151_v9  ;;  %v116_v3 = vld [vmem:[#allocation2 + $0x8] sm:$0xff] }
  0x21   :  { %v2567_v13 = vor.u32 %v3634_v11, %v2566_v10  ;;  %v2694_v14 = vld [vmem:[#allocation5 + $0x1c0] sm:$0xf]  ;;  %v3666_v15 = vld [vmem:[#allocation5 + $0x1cc] sm:$0xf0]  ;;  %930 = vmatpush.bf16.msra.mxu1 %v2711_v7  ;;  %121 = vst [vmem:[#allocation1 + $0x10] ss:$2 sm:$0xff] %v116_v3 }
  0x22   :  { %v2822_v16 = vld [vmem:[#allocation5 + $0x2c0] sm:$0xf]  ;;  %943 = vmatpush.bf16.msra.mxu2 %v2839_v8  ;;  %v2695_v17 = vor.u32 %v3666_v15, %v2694_v14  ;;  %v3698_v18 = vld [vmem:[#allocation5 + $0x2cc] sm:$0xf0]  ;;  %v772_v21 = vpack.c.b16 %v644_v12, %v644_v12 }
  0x23   :  { %v2950_v19 = vld [vmem:[#allocation5 + $0x3c0] sm:$0xf]  ;;  %v3730_v20 = vld [vmem:[#allocation5 + $0x3cc] sm:$0xf0]  ;;  %v2823_v22 = vor.u32 %v3698_v18, %v2822_v16 }
  0x24   :  { %v2550_v23 = vld [vmem:[#allocation5 + $0xa0] sm:$0xf]  ;;  %v3630_v24 = vld [vmem:[#allocation5 + $0xac] sm:$0xf0]  ;;  %v906_v29 = vsel %vm904_vm0, %v772_v21, 0  ;;  %918 = vmatpush.bf16.msra.mxu0 %v2567_v13  ;;  %v2951_v31 = vor.u32 %v3730_v20, %v2950_v19 }
  0x25   :  { %v2678_v25 = vld [vmem:[#allocation5 + $0x1a0] sm:$0xf]  ;;  %v3662_v26 = vld [vmem:[#allocation5 + $0x1ac] sm:$0xf0]  ;;  %v2551_v30 = vor.u32 %v3630_v24, %v2550_v23  ;;  %956 = vmatpush.bf16.msra.mxu3 %v906_v29  ;;  %931 = vmatpush.bf16.msra.mxu1 %v2695_v17 }
  0x26   :  { %v2806_v27 = vld [vmem:[#allocation5 + $0x2a0] sm:$0xf]  ;;  %v3694_v28 = vld [vmem:[#allocation5 + $0x2ac] sm:$0xf0]  ;;  %v2679_v32 = vor.u32 %v3662_v26, %v2678_v25  ;;  %944 = vmatpush.bf16.msra.mxu2 %v2823_v22  ;;  %v645_v26 = vunpack.c.h.b16 %v4151_v9 }
  0x27   :  { %v2934_v33 = vld [vmem:[#allocation5 + $0x3a0] sm:$0xf]  ;;  %v3626_v35 = vld [vmem:[#allocation5 + $0x8c] sm:$0xf0]  ;;  %v2807_v36 = vor.u32 %v3694_v28, %v2806_v27 }
  0x28   :  { %v2534_v34 = vld [vmem:[#allocation5 + $0x80] sm:$0xf]  ;;  %v3726_v37 = vld [vmem:[#allocation5 + $0x3ac] sm:$0xf0]  ;;  %919 = vmatpush.bf16.msra.mxu0 %v2551_v30  ;;  %v3636_v30 = vld [vmem:[#allocation5 + $0xe4] sm:$0xf] }
  0x29   :  { %v2662_v38 = vld [vmem:[#allocation5 + $0x180] sm:$0xf]  ;;  %v3658_v39 = vld [vmem:[#allocation5 + $0x18c] sm:$0xf0]  ;;  %v2535_v42 = vor.u32 %v3626_v35, %v2534_v34  ;;  %957 = vmatpush.bf16.msra.mxu3 %v2951_v31  ;;  %932 = vmatpush.bf16.msra.mxu1 %v2679_v32  ;;  %v2935_v43 = vor.u32 %v3726_v37, %v2934_v33  ;;  %v2584_v31 = vld [vmem:[#allocation5 + $0xf0] sm:$0xf0] }
  0x2a   :  { %v2790_v40 = vld [vmem:[#allocation5 + $0x280] sm:$0xf]  ;;  %v3690_v41 = vld [vmem:[#allocation5 + $0x28c] sm:$0xf0]  ;;  %v2663_v44 = vor.u32 %v3658_v39, %v2662_v38  ;;  %945 = vmatpush.bf16.msra.mxu2 %v2807_v36  ;;  %v3668_v32 = vld [vmem:[#allocation5 + $0x1e4] sm:$0xf] }
  0x2b   :  { %v2918_v45 = vld [vmem:[#allocation5 + $0x380] sm:$0xf]  ;;  %v3622_v47 = vld [vmem:[#allocation5 + $0x6c] sm:$0xf0]  ;;  %v2791_v48 = vor.u32 %v3690_v41, %v2790_v40  ;;  %v2712_v34 = vld [vmem:[#allocation5 + $0x1f0] sm:$0xf0]  ;;  %v773_v40 = vpack.c.b16 %v645_v26, %v645_v26  ;;  %v2587_v41 = vor.u32 %v3636_v30, %v2584_v31 }
  0x2c   :  { %v2518_v46 = vld [vmem:[#allocation5 + $0x60] sm:$0xf]  ;;  %v3722_v49 = vld [vmem:[#allocation5 + $0x38c] sm:$0xf0]  ;;  %920 = vmatpush.bf16.msra.mxu0 %v2535_v42  ;;  %v3700_v35 = vld [vmem:[#allocation5 + $0x2e4] sm:$0xf] }
  0x2d   :  { %v2646_v50 = vld [vmem:[#allocation5 + $0x160] sm:$0xf]  ;;  %v3654_v51 = vld [vmem:[#allocation5 + $0x16c] sm:$0xf0]  ;;  %v2519_v54 = vor.u32 %v3622_v47, %v2518_v46  ;;  %958 = vmatpush.bf16.msra.mxu3 %v2935_v43  ;;  %933 = vmatpush.bf16.msra.mxu1 %v2663_v44  ;;  %v2919_v55 = vor.u32 %v3722_v49, %v2918_v45  ;;  %v2840_v36 = vld [vmem:[#allocation5 + $0x2f0] sm:$0xf0]  ;;  %v2715_v45 = vor.u32 %v3668_v32, %v2712_v34 }
  0x2e   :  { %v2774_v52 = vld [vmem:[#allocation5 + $0x260] sm:$0xf]  ;;  %v3686_v53 = vld [vmem:[#allocation5 + $0x26c] sm:$0xf0]  ;;  %v2647_v56 = vor.u32 %v3654_v51, %v2646_v50  ;;  %946 = vmatpush.bf16.msra.mxu2 %v2791_v48  ;;  %v3632_v43 = vld [vmem:[#allocation5 + $0xc4] sm:$0xf]  ;;  %v2843_v46 = vor.u32 %v3700_v35, %v2840_v36 }
  0x2f   :  { %v2902_v57 = vld [vmem:[#allocation5 + $0x360] sm:$0xf]  ;;  %v3618_v59 = vld [vmem:[#allocation5 + $0x4c] sm:$0xf0]  ;;  %v2775_v60 = vor.u32 %v3686_v53, %v2774_v52  ;;  %v2568_v44 = vld [vmem:[#allocation5 + $0xd0] sm:$0xf0] }
  0x30   :  { %v2502_v58 = vld [vmem:[#allocation5 + $0x40] sm:$0xf]  ;;  %v3718_v61 = vld [vmem:[#allocation5 + $0x36c] sm:$0xf0]  ;;  %921 = vmatpush.bf16.msra.mxu0 %v2519_v54  ;;  %v3664_v48 = vld [vmem:[#allocation5 + $0x1c4] sm:$0xf] }
  0x31   :  { %v2630_v62 = vld [vmem:[#allocation5 + $0x140] sm:$0xf]  ;;  %v3650_v63 = vld [vmem:[#allocation5 + $0x14c] sm:$0xf0]  ;;  %v2503_v2 = vor.u32 %v3618_v59, %v2502_v58  ;;  %959 = vmatpush.bf16.msra.mxu3 %v2919_v55  ;;  %934 = vmatpush.bf16.msra.mxu1 %v2647_v56  ;;  %v2903_v4 = vor.u32 %v3718_v61, %v2902_v57  ;;  %v2696_v49 = vld [vmem:[#allocation5 + $0x1d0] sm:$0xf0]  ;;  %v2571_v58 = vor.u32 %v3632_v43, %v2568_v44 }
  0x32   :  { %v2758_v0 = vld [vmem:[#allocation5 + $0x240] sm:$0xf]  ;;  %v3682_v1 = vld [vmem:[#allocation5 + $0x24c] sm:$0xf0]  ;;  %v2631_v5 = vor.u32 %v3650_v63, %v2630_v62  ;;  %947 = vmatpush.bf16.msra.mxu2 %v2775_v60  ;;  %v3696_v50 = vld [vmem:[#allocation5 + $0x2c4] sm:$0xf]  ;;  %v2699_v61 = vor.u32 %v3664_v48, %v2696_v49 }
  0x33   :  { %v2886_v6 = vld [vmem:[#allocation5 + $0x340] sm:$0xf]  ;;  %v3614_v8 = vld [vmem:[#allocation5 + $0x2c] sm:$0xf0]  ;;  %v2759_v10 = vor.u32 %v3682_v1, %v2758_v0  ;;  %v2824_v51 = vld [vmem:[#allocation5 + $0x2d0] sm:$0xf0] }
  0x34   :  { %v2486_v7 = vld [vmem:[#allocation5 + $0x20] sm:$0xf]  ;;  %v3714_v11 = vld [vmem:[#allocation5 + $0x34c] sm:$0xf0]  ;;  %922 = vmatpush.bf16.msra.mxu0 %v2503_v2  ;;  %v909_v54 = vsel %vm904_vm0, %v773_v40, 0  ;;  %v2827_v62 = vor.u32 %v3696_v50, %v2824_v51 }
  0x35   :  { %v2614_v12 = vld [vmem:[#allocation5 + $0x120] sm:$0xf]  ;;  %v3646_v13 = vld [vmem:[#allocation5 + $0x12c] sm:$0xf0]  ;;  %v2487_v16 = vor.u32 %v3614_v8, %v2486_v7  ;;  %960 = vmatpush.bf16.msra.mxu3 %v2903_v4  ;;  %935 = vmatpush.bf16.msra.mxu1 %v2631_v5  ;;  %v2887_v21 = vor.u32 %v3714_v11, %v2886_v6  ;;  %v3728_v56 = vld [vmem:[#allocation5 + $0x3c4] sm:$0xf] }
  0x36   :  { %v2742_v14 = vld [vmem:[#allocation5 + $0x220] sm:$0xf]  ;;  %v3678_v15 = vld [vmem:[#allocation5 + $0x22c] sm:$0xf0]  ;;  %v2615_v22 = vor.u32 %v3646_v13, %v2614_v12  ;;  %948 = vmatpush.bf16.msra.mxu2 %v2759_v10  ;;  %v2952_v57 = vld [vmem:[#allocation5 + $0x3d0] sm:$0xf0] }
  0x37   :  { %v2870_v17 = vld [vmem:[#allocation5 + $0x320] sm:$0xf]  ;;  %v3710_v18 = vld [vmem:[#allocation5 + $0x32c] sm:$0xf0]  ;;  %v2743_v27 = vor.u32 %v3678_v15, %v2742_v14  ;;  %v3628_v63 = vld [vmem:[#allocation5 + $0xa4] sm:$0xf]  ;;  %v2955_v8 = vor.u32 %v3728_v56, %v2952_v57 }
  0x38   :  { %v2470_v19 = vld [vmem:[#allocation5] sm:$0xf]  ;;  %v115_v20 = vld [vmem:[#allocation2] sm:$0xff]  ;;  %923 = vmatpush.bf16.msra.mxu0 %v2487_v16  ;;  %v2871_v37 = vor.u32 %v3710_v18, %v2870_v17  ;;  %v124_v47 = vld.sshfl [vmem:[#allocation1 + $0x10] sm:$0xff pattern:$0x75316420] }
  0x39   :  { %v3610_v23 = vld [vmem:[#allocation5 + $0xc] sm:$0xf0]  ;;  %v2598_v24 = vld [vmem:[#allocation5 + $0x100] sm:$0xf]  ;;  %119 = vst [vmem:[#allocation1] ss:$2 sm:$0xff] %v115_v20  ;;  %961 = vmatpush.bf16.msra.mxu3 %v2887_v21  ;;  %936 = vmatpush.bf16.msra.mxu1 %v2615_v22  ;;  %v4156_v53 = vpack.c.bf16 %v124_v47, %v124_v47 }
  0x3a   :  { %v3642_v25 = vld [vmem:[#allocation5 + $0x10c] sm:$0xf0]  ;;  %v2726_v28 = vld [vmem:[#allocation5 + $0x200] sm:$0xf]  ;;  %v2471_v33 = vor.u32 %v3610_v23, %v2470_v19  ;;  %949 = vmatpush.bf16.msra.mxu2 %v2743_v27  ;;  %v2552_v0 = vld [vmem:[#allocation5 + $0xb0] sm:$0xf0] }
  0x3b   :  { %v3674_v29 = vld [vmem:[#allocation5 + $0x20c] sm:$0xf0]  ;;  %v2599_v38 = vor.u32 %v3642_v25, %v2598_v24  ;;  %v2854_v39 = vld [vmem:[#allocation5 + $0x300] sm:$0xf]  ;;  %v3660_v1 = vld [vmem:[#allocation5 + $0x1a4] sm:$0xf]  ;;  %v2555_v10 = vor.u32 %v3628_v63, %v2552_v0 }
  0x3c   :  { %v2727_v9 = vor.u32 %v3674_v29, %v2726_v28  ;;  %v3706_v42 = vld [vmem:[#allocation5 + $0x30c] sm:$0xf0]  ;;  %924 = vmatpush.bf16.msra.mxu0 %v2471_v33  ;;  %v125_v55 = vld.sshfl [vmem:[#allocation1 + $0x18] sm:$0xff pattern:$0x75316420] }
  0x3d   :  { %962 = vmatpush.bf16.msra.mxu3 %v2871_v37  ;;  %937 = vmatpush.bf16.msra.mxu1 %v2599_v38  ;;  %v2855_v52 = vor.u32 %v3706_v42, %v2854_v39  ;;  %v4161_v3 = vpack.c.bf16 %v125_v55, %v125_v55  ;;  %v2680_v4 = vld [vmem:[#allocation5 + $0x1b0] sm:$0xf0]  ;;  %v3692_v5 = vld [vmem:[#allocation5 + $0x2a4] sm:$0xf]  ;;  %v4170_v57 = vld [vmem:[#allocation5 + $0x3e8] sm:$0x33] }
  0x3e   :  { %950 = vmatpush.bf16.msra.mxu2 %v2727_v9  ;;  %v2808_v6 = vld [vmem:[#allocation5 + $0x2b0] sm:$0xf0]  ;;  %v3724_v11 = vld [vmem:[#allocation5 + $0x3a4] sm:$0xf]  ;;  %v2683_v13 = vor.u32 %v3660_v1, %v2680_v4 }
  0x3f   :  { %v2936_v12 = vld [vmem:[#allocation5 + $0x3b0] sm:$0xf0]  ;;  %v2811_v14 = vor.u32 %v3692_v5, %v2808_v6  ;;  %v3624_v15 = vld [vmem:[#allocation5 + $0x84] sm:$0xf] }
  0x40   :  { %969 = vmatpush.bf16.msrb.mxu0 %v2587_v41  ;;  %v122_v59 = vld.sshfl [vmem:[#allocation1] sm:$0xff pattern:$0x75316420]  ;;  %v123_v60 = vld.sshfl [vmem:[#allocation1 + $0x8] sm:$0xff pattern:$0x75316420]  ;;  %v2939_v21 = vor.u32 %v3724_v11, %v2936_v12  ;;  %v646_v11 = vunpack.c.l.b16 %v4170_v57 }
  0x41   :  { %982 = vmatpush.bf16.msrb.mxu1 %v2715_v45  ;;  %v4159_v2 = vpack.c.bf16 %v122_v59, %v122_v59  ;;  %963 = vmatpush.bf16.msra.mxu3 %v2855_v52  ;;  %v4164_v7 = vpack.c.bf16 %v123_v60, %v123_v60  ;;  %v2536_v16 = vld [vmem:[#allocation5 + $0x90] sm:$0xf0]  ;;  %v3656_v17 = vld [vmem:[#allocation5 + $0x184] sm:$0xf]  ;;  %v3639_v12 = vld [vmem:[#allocation5 + $0xf4] sm:$0xf0] }
  0x42   :  { %995 = vmatpush.bf16.msrb.mxu2 %v2843_v46  ;;  %v2664_v18 = vld [vmem:[#allocation5 + $0x190] sm:$0xf0]  ;;  %v3688_v19 = vld [vmem:[#allocation5 + $0x284] sm:$0xf]  ;;  %v2539_v22 = vor.u32 %v3624_v15, %v2536_v16 }
  0x43   :  { %951 = vmatmul.bf16.vlgmr.msra.gmra.mxu2 %v4156_v53  ;;  %925 = vmatmul.bf16.vlgmr.msra.gmra.mxu0 %v4159_v2  ;;  %v2792_v20 = vld [vmem:[#allocation5 + $0x290] sm:$0xf0]  ;;  %v3720_v23 = vld [vmem:[#allocation5 + $0x384] sm:$0xf]  ;;  %v2667_v25 = vor.u32 %v3656_v17, %v2664_v18  ;;  %v2846_v17 = vld [vmem:[#allocation5 + $0x2e8] sm:$0xf] }
  0x44   :  { %970 = vmatpush.bf16.msrb.mxu0 %v2571_v58  ;;  %2964 = vmatmul.msk.bf16.vlgmr.msra.gmra.mxu3 %vm900_vm1, %v4161_v3  ;;  %v2920_v24 = vld [vmem:[#allocation5 + $0x390] sm:$0xf0]  ;;  %v2795_v26 = vor.u32 %v3688_v19, %v2792_v20  ;;  %v3620_v27 = vld [vmem:[#allocation5 + $0x64] sm:$0xf]  ;;  %v3703_v18 = vld [vmem:[#allocation5 + $0x2f4] sm:$0xf0] }
  0x45   :  { %1008 = vmatpush.bf16.msrb.mxu3 %v909_v54  ;;  %983 = vmatpush.bf16.msrb.mxu1 %v2699_v61  ;;  %v2520_v28 = vld [vmem:[#allocation5 + $0x70] sm:$0xf0]  ;;  %v3652_v29 = vld [vmem:[#allocation5 + $0x164] sm:$0xf]  ;;  %v2923_v33 = vor.u32 %v3720_v23, %v2920_v24 }
  0x46   :  { %996 = vmatpush.bf16.msrb.mxu2 %v2827_v62  ;;  %938 = vmatmul.bf16.vlgmr.msra.gmra.mxu1 %v4164_v7  ;;  %v2648_v30 = vld [vmem:[#allocation5 + $0x170] sm:$0xf0]  ;;  %v3684_v31 = vld [vmem:[#allocation5 + $0x264] sm:$0xf]  ;;  %v2523_v34 = vor.u32 %v3620_v27, %v2520_v28  ;;  %v2847_v27 = vor.u32 %v3703_v18, %v2846_v17  ;;  %v3635_v28 = vld [vmem:[#allocation5 + $0xd4] sm:$0xf0] }
  0x47   :  { %v2776_v32 = vld [vmem:[#allocation5 + $0x270] sm:$0xf0]  ;;  %v3716_v35 = vld [vmem:[#allocation5 + $0x364] sm:$0xf]  ;;  %v2651_v37 = vor.u32 %v3652_v29, %v2648_v30  ;;  %v2702_v29 = vld [vmem:[#allocation5 + $0x1c8] sm:$0xf] }
  0x48   :  { %971 = vmatpush.bf16.msrb.mxu0 %v2555_v10  ;;  %v2904_v36 = vld [vmem:[#allocation5 + $0x370] sm:$0xf0]  ;;  %v2779_v38 = vor.u32 %v3684_v31, %v2776_v32  ;;  %v3616_v39 = vld [vmem:[#allocation5 + $0x44] sm:$0xf]  ;;  %v2590_v10 = vld [vmem:[#allocation5 + $0xe8] sm:$0xf] }
  0x49   :  { %1009 = vmatpush.bf16.msrb.mxu3 %v2955_v8  ;;  %984 = vmatpush.bf16.msrb.mxu1 %v2683_v13  ;;  %v2504_v40 = vld [vmem:[#allocation5 + $0x50] sm:$0xf0]  ;;  %v3648_v9 = vld [vmem:[#allocation5 + $0x144] sm:$0xf]  ;;  %v2907_v44 = vor.u32 %v3716_v35, %v2904_v36  ;;  %v2718_v13 = vld [vmem:[#allocation5 + $0x1e8] sm:$0xf]  ;;  %v2591_v23 = vor.u32 %v3639_v12, %v2590_v10 }
  0x4a   :  { %997 = vmatpush.bf16.msrb.mxu2 %v2811_v14  ;;  %v2632_v41 = vld [vmem:[#allocation5 + $0x150] sm:$0xf0]  ;;  %v3680_v42 = vld [vmem:[#allocation5 + $0x244] sm:$0xf]  ;;  %v2507_v45 = vor.u32 %v3616_v39, %v2504_v40  ;;  %v3671_v14 = vld [vmem:[#allocation5 + $0x1f4] sm:$0xf0] }
  0x4b   :  { %v2760_v43 = vld [vmem:[#allocation5 + $0x250] sm:$0xf0]  ;;  %v3712_v46 = vld [vmem:[#allocation5 + $0x344] sm:$0xf]  ;;  %v2635_v48 = vor.u32 %v3648_v9, %v2632_v41  ;;  %v2719_v24 = vor.u32 %v3671_v14, %v2718_v13  ;;  %v3667_v30 = vld [vmem:[#allocation5 + $0x1d4] sm:$0xf0] }
  0x4c   :  { %972 = vmatpush.bf16.msrb.mxu0 %v2539_v22  ;;  %v2888_v47 = vld [vmem:[#allocation5 + $0x350] sm:$0xf0]  ;;  %v2763_v49 = vor.u32 %v3680_v42, %v2760_v43  ;;  %v3612_v50 = vld [vmem:[#allocation5 + $0x24] sm:$0xf]  ;;  %v2830_v32 = vld [vmem:[#allocation5 + $0x2c8] sm:$0xf] }
  0x4d   :  { %1010 = vmatpush.bf16.msrb.mxu3 %v2939_v21  ;;  %985 = vmatpush.bf16.msrb.mxu1 %v2667_v25  ;;  %v2488_v51 = vld [vmem:[#allocation5 + $0x30] sm:$0xf0]  ;;  %v3644_v52 = vld [vmem:[#allocation5 + $0x124] sm:$0xf]  ;;  %v2891_v58 = vor.u32 %v3712_v46, %v2888_v47  ;;  %v774_v25 = vpack.c.b16 %v646_v11, %v646_v11  ;;  %v2558_v39 = vld [vmem:[#allocation5 + $0xa8] sm:$0xf] }
  0x4e   :  { %998 = vmatpush.bf16.msrb.mxu2 %v2795_v26  ;;  %v2616_v54 = vld [vmem:[#allocation5 + $0x130] sm:$0xf0]  ;;  %v3676_v55 = vld [vmem:[#allocation5 + $0x224] sm:$0xf]  ;;  %v2491_v59 = vor.u32 %v3612_v50, %v2488_v51  ;;  %v2574_v26 = vld [vmem:[#allocation5 + $0xc8] sm:$0xf] }
  0x4f   :  { %v2744_v56 = vld [vmem:[#allocation5 + $0x230] sm:$0xf0]  ;;  %v3708_v60 = vld [vmem:[#allocation5 + $0x324] sm:$0xf]  ;;  %v2619_v63 = vor.u32 %v3644_v52, %v2616_v54  ;;  %v912_v35 = vsel %vm904_vm0, %v774_v25, 0  ;;  %v2575_v36 = vor.u32 %v3635_v28, %v2574_v26 }
  0x50   :  { %973 = vmatpush.bf16.msrb.mxu0 %v2523_v34  ;;  %v2872_v61 = vld [vmem:[#allocation5 + $0x330] sm:$0xf0]  ;;  %v3608_v62 = vld [vmem:[#allocation5 + $0x4] sm:$0xf]  ;;  %v2747_v0 = vor.u32 %v3676_v55, %v2744_v56  ;;  %v2958_v34 = vld [vmem:[#allocation5 + $0x3c8] sm:$0xf] }
  0x51   :  { %1011 = vmatpush.bf16.msrb.mxu3 %v2923_v33  ;;  %986 = vmatpush.bf16.msrb.mxu1 %v2651_v37  ;;  %v2472_v1 = vld [vmem:[#allocation5 + $0x10] sm:$0xf0]  ;;  %v3640_v4 = vld [vmem:[#allocation5 + $0x104] sm:$0xf]  ;;  %v2875_v15 = vor.u32 %v3708_v60, %v2872_v61  ;;  %v3699_v33 = vld [vmem:[#allocation5 + $0x2d4] sm:$0xf0]  ;;  %v2703_v37 = vor.u32 %v3667_v30, %v2702_v29 }
  0x52   :  { %999 = vmatpush.bf16.msrb.mxu2 %v2779_v38  ;;  %v2600_v5 = vld [vmem:[#allocation5 + $0x110] sm:$0xf0]  ;;  %v3672_v6 = vld [vmem:[#allocation5 + $0x204] sm:$0xf]  ;;  %v2475_v16 = vor.u32 %v3608_v62, %v2472_v1  ;;  %v3731_v38 = vld [vmem:[#allocation5 + $0x3d4] sm:$0xf0]  ;;  %v2831_v40 = vor.u32 %v3699_v33, %v2830_v32 }
  0x53   :  { %v2728_v8 = vld [vmem:[#allocation5 + $0x210] sm:$0xf0]  ;;  %v2603_v19 = vor.u32 %v3640_v4, %v2600_v5  ;;  %v3704_v21 = vld [vmem:[#allocation5 + $0x304] sm:$0xf]  ;;  %v3631_v9 = vld [vmem:[#allocation5 + $0xb4] sm:$0xf0] }
  0x54   :  { %974 = vmatpush.bf16.msrb.mxu0 %v2507_v45  ;;  %v2731_v20 = vor.u32 %v3672_v6, %v2728_v8  ;;  %v2856_v22 = vld [vmem:[#allocation5 + $0x310] sm:$0xf0]  ;;  %v2686_v41 = vld [vmem:[#allocation5 + $0x1a8] sm:$0xf]  ;;  %v3663_v42 = vld [vmem:[#allocation5 + $0x1b4] sm:$0xf0]  ;;  %v2959_v45 = vor.u32 %v3731_v38, %v2958_v34  ;;  %v2559_v46 = vor.u32 %v3631_v9, %v2558_v39 }
  0x55   :  { %1012 = vmatpush.bf16.msrb.mxu3 %v2907_v44  ;;  %987 = vmatpush.bf16.msrb.mxu1 %v2635_v48  ;;  %v2859_v31 = vor.u32 %v3704_v21, %v2856_v22  ;;  %v2814_v43 = vld [vmem:[#allocation5 + $0x2a8] sm:$0xf]  ;;  %v3695_v44 = vld [vmem:[#allocation5 + $0x2b4] sm:$0xf0]  ;;  %v2687_v47 = vor.u32 %v3663_v42, %v2686_v41 }
  0x56   :  { %1000 = vmatpush.bf16.msrb.mxu2 %v2763_v49  ;;  %v2942_v48 = vld [vmem:[#allocation5 + $0x3a8] sm:$0xf]  ;;  %v3727_v49 = vld [vmem:[#allocation5 + $0x3b4] sm:$0xf0]  ;;  %v2815_v51 = vor.u32 %v3695_v44, %v2814_v43 }
  0x57   :  { %v2542_v50 = vld [vmem:[#allocation5 + $0x88] sm:$0xf]  ;;  %v3627_v52 = vld [vmem:[#allocation5 + $0x94] sm:$0xf0] }
  0x58   :  { %975 = vmatpush.bf16.msrb.mxu0 %v2491_v59  ;;  %v2670_v54 = vld [vmem:[#allocation5 + $0x188] sm:$0xf]  ;;  %v3659_v55 = vld [vmem:[#allocation5 + $0x194] sm:$0xf0]  ;;  %v2943_v59 = vor.u32 %v3727_v49, %v2942_v48  ;;  %v2543_v60 = vor.u32 %v3627_v52, %v2542_v50  ;;  %v2592_v48 = vld [vmem:[#allocation5 + $0xf8] sm:$0xf0] }
  0x59   :  { %1013 = vmatpush.bf16.msrb.mxu3 %v2891_v58  ;;  %988 = vmatpush.bf16.msrb.mxu1 %v2619_v63  ;;  %v2798_v56 = vld [vmem:[#allocation5 + $0x288] sm:$0xf]  ;;  %v3691_v58 = vld [vmem:[#allocation5 + $0x294] sm:$0xf0]  ;;  %v2671_v61 = vor.u32 %v3659_v55, %v2670_v54  ;;  %v3669_v49 = vld [vmem:[#allocation5 + $0x1ec] sm:$0xf] }
  0x5a   :  { %1001 = vmatpush.bf16.msrb.mxu2 %v2747_v0  ;;  %v2926_v62 = vld [vmem:[#allocation5 + $0x388] sm:$0xf]  ;;  %v3723_v63 = vld [vmem:[#allocation5 + $0x394] sm:$0xf0]  ;;  %v2799_v1 = vor.u32 %v3691_v58, %v2798_v56  ;;  %v3701_v52 = vld [vmem:[#allocation5 + $0x2ec] sm:$0xf] }
  0x5b   :  { %v2526_v0 = vld [vmem:[#allocation5 + $0x68] sm:$0xf]  ;;  %v3623_v4 = vld [vmem:[#allocation5 + $0x74] sm:$0xf0]  ;;  %v2927_v11 = vor.u32 %v3723_v63, %v2926_v62  ;;  %v2848_v54 = vld [vmem:[#allocation5 + $0x2f8] sm:$0xf0] }
  0x5c   :  { %976 = vmatpush.bf16.msrb.mxu0 %v2475_v16  ;;  %v2654_v5 = vld [vmem:[#allocation5 + $0x168] sm:$0xf]  ;;  %v3655_v6 = vld [vmem:[#allocation5 + $0x174] sm:$0xf0]  ;;  %v2527_v12 = vor.u32 %v3623_v4, %v2526_v0  ;;  %v3633_v0 = vld [vmem:[#allocation5 + $0xcc] sm:$0xf] }
  0x5d   :  { %1014 = vmatpush.bf16.msrb.mxu3 %v2875_v15  ;;  %989 = vmatpush.bf16.msrb.mxu1 %v2603_v19  ;;  %v2782_v8 = vld [vmem:[#allocation5 + $0x268] sm:$0xf]  ;;  %v3687_v10 = vld [vmem:[#allocation5 + $0x274] sm:$0xf0]  ;;  %v2655_v13 = vor.u32 %v3655_v6, %v2654_v5  ;;  %v3665_v4 = vld [vmem:[#allocation5 + $0x1cc] sm:$0xf] }
  0x5e   :  { %1002 = vmatpush.bf16.msrb.mxu2 %v2731_v20  ;;  %v2910_v14 = vld [vmem:[#allocation5 + $0x368] sm:$0xf]  ;;  %v3719_v15 = vld [vmem:[#allocation5 + $0x374] sm:$0xf0]  ;;  %v2783_v17 = vor.u32 %v3687_v10, %v2782_v8  ;;  %v2704_v6 = vld [vmem:[#allocation5 + $0x1d8] sm:$0xf0] }
  0x5f   :  { %977 = vmatmul.bf16.vlgmr.msrb.gmra.mxu0 %v4159_v2  ;;  %v2510_v16 = vld [vmem:[#allocation5 + $0x48] sm:$0xf]  ;;  %v3619_v18 = vld [vmem:[#allocation5 + $0x54] sm:$0xf0]  ;;  %v3697_v8 = vld [vmem:[#allocation5 + $0x2cc] sm:$0xf] }
  0x60   :  { %1021 = vmatpush.bf16.msra.mxu0 %v2591_v23  ;;  %990 = vmatmul.bf16.vlgmr.msrb.gmra.mxu1 %v4164_v7  ;;  %v2638_v19 = vld [vmem:[#allocation5 + $0x148] sm:$0xf]  ;;  %v3651_v20 = vld [vmem:[#allocation5 + $0x154] sm:$0xf0]  ;;  %v2911_v23 = vor.u32 %v3719_v15, %v2910_v14  ;;  %v2832_v10 = vld [vmem:[#allocation5 + $0x2d8] sm:$0xf0]  ;;  %v2707_v15 = vor.u32 %v3665_v4, %v2704_v6 }
  0x61   :  { %1034 = vmatpush.bf16.msra.mxu1 %v2719_v24  ;;  %1015 = vmatpush.bf16.msrb.mxu3 %v2859_v31  ;;  %v2766_v21 = vld [vmem:[#allocation5 + $0x248] sm:$0xf]  ;;  %v3683_v22 = vld [vmem:[#allocation5 + $0x254] sm:$0xf0]  ;;  %v2511_v24 = vor.u32 %v3619_v18, %v2510_v16  ;;  %v2639_v25 = vor.u32 %v3651_v20, %v2638_v19  ;;  %v2960_v14 = vld [vmem:[#allocation5 + $0x3d8] sm:$0xf0]  ;;  %v2835_v16 = vor.u32 %v3697_v8, %v2832_v10 }
  0x62   :  { %1047 = vmatpush.bf16.msra.mxu2 %v2847_v27  ;;  %v2894_v26 = vld [vmem:[#allocation5 + $0x348] sm:$0xf]  ;;  %v3715_v27 = vld [vmem:[#allocation5 + $0x354] sm:$0xf0]  ;;  %v2767_v29 = vor.u32 %v3683_v22, %v2766_v21  ;;  %v2560_v18 = vld [vmem:[#allocation5 + $0xb8] sm:$0xf0] }
  0x63   :  { %1003 = vmatmul.bf16.vlgmr.msrb.gmra.mxu2 %v4156_v53  ;;  %v2494_v28 = vld [vmem:[#allocation5 + $0x28] sm:$0xf]  ;;  %v3615_v30 = vld [vmem:[#allocation5 + $0x34] sm:$0xf0]  ;;  %v3661_v19 = vld [vmem:[#allocation5 + $0x1ac] sm:$0xf] }
  0x64   :  { %1022 = vmatpush.bf16.msra.mxu0 %v2575_v36  ;;  %2965 = vmatmul.msk.bf16.vlgmr.msrb.gmra.mxu3 %vm900_vm1, %v4161_v3  ;;  %v2622_v31 = vld [vmem:[#allocation5 + $0x128] sm:$0xf]  ;;  %v3647_v32 = vld [vmem:[#allocation5 + $0x134] sm:$0xf0]  ;;  %v2495_v39 = vor.u32 %v3615_v30, %v2494_v28  ;;  %v2688_v20 = vld [vmem:[#allocation5 + $0x1b8] sm:$0xf0] }
  0x65   :  { %1060 = vmatpush.bf16.msra.mxu3 %v912_v35  ;;  %1035 = vmatpush.bf16.msra.mxu1 %v2703_v37  ;;  %v2750_v33 = vld [vmem:[#allocation5 + $0x228] sm:$0xf]  ;;  %v3679_v34 = vld [vmem:[#allocation5 + $0x234] sm:$0xf0]  ;;  %v2895_v35 = vor.u32 %v3715_v27, %v2894_v26  ;;  %v3693_v21 = vld [vmem:[#allocation5 + $0x2ac] sm:$0xf]  ;;  %v2691_v27 = vor.u32 %v3661_v19, %v2688_v20 }
  0x66   :  { %1048 = vmatpush.bf16.msra.mxu2 %v2831_v40  ;;  %v2878_v36 = vld [vmem:[#allocation5 + $0x328] sm:$0xf]  ;;  %v3711_v37 = vld [vmem:[#allocation5 + $0x334] sm:$0xf0]  ;;  %v2623_v40 = vor.u32 %v3647_v32, %v2622_v31  ;;  %v2751_v43 = vor.u32 %v3679_v34, %v2750_v33  ;;  %v2816_v22 = vld [vmem:[#allocation5 + $0x2b8] sm:$0xf0] }
  0x67   :  { %v2478_v38 = vld [vmem:[#allocation5 + $0x8] sm:$0xf]  ;;  %v3611_v9 = vld [vmem:[#allocation5 + $0x14] sm:$0xf0]  ;;  %v2879_v50 = vor.u32 %v3711_v37, %v2878_v36  ;;  %v2944_v26 = vld [vmem:[#allocation5 + $0x3b8] sm:$0xf0]  ;;  %v2819_v28 = vor.u32 %v3693_v21, %v2816_v22 }
  0x68   :  { %1023 = vmatpush.bf16.msra.mxu0 %v2559_v46  ;;  %v2606_v41 = vld [vmem:[#allocation5 + $0x108] sm:$0xf]  ;;  %v3643_v42 = vld [vmem:[#allocation5 + $0x114] sm:$0xf0]  ;;  %v647_v46 = vunpack.c.h.b16 %v4170_v57  ;;  %v2479_v55 = vor.u32 %v3611_v9, %v2478_v38  ;;  %v2851_v57 = vor.u32 %v3701_v52, %v2848_v54  ;;  %v2544_v30 = vld [vmem:[#allocation5 + $0x98] sm:$0xf0] }
  0x69   :  { %1061 = vmatpush.bf16.msra.mxu3 %v2959_v45  ;;  %1036 = vmatpush.bf16.msra.mxu1 %v2687_v47  ;;  %v2734_v44 = vld [vmem:[#allocation5 + $0x208] sm:$0xf]  ;;  %v3675_v45 = vld [vmem:[#allocation5 + $0x214] sm:$0xf0]  ;;  %v3637_v47 = vld [vmem:[#allocation5 + $0xec] sm:$0xf]  ;;  %v2607_v56 = vor.u32 %v3643_v42, %v2606_v41 }
  0x6a   :  { %1049 = vmatpush.bf16.msra.mxu2 %v2815_v51  ;;  %v2720_v51 = vld [vmem:[#allocation5 + $0x1f8] sm:$0xf0]  ;;  %v2862_v58 = vld [vmem:[#allocation5 + $0x308] sm:$0xf]  ;;  %v775_v62 = vpack.c.b16 %v647_v46, %v647_v46  ;;  %v3657_v31 = vld [vmem:[#allocation5 + $0x18c] sm:$0xf] }
  0x6b   :  { %v2723_v63 = vor.u32 %v3669_v49, %v2720_v51  ;;  %v2672_v32 = vld [vmem:[#allocation5 + $0x198] sm:$0xf0]  ;;  %v3689_v33 = vld [vmem:[#allocation5 + $0x28c] sm:$0xf] }
  0x6c   :  { %1024 = vmatpush.bf16.msra.mxu0 %v2543_v60  ;;  %v2735_v60 = vor.u32 %v3675_v45, %v2734_v44  ;;  %v2800_v34 = vld [vmem:[#allocation5 + $0x298] sm:$0xf0]  ;;  %v3721_v37 = vld [vmem:[#allocation5 + $0x38c] sm:$0xf] }
  0x6d   :  { %1062 = vmatpush.bf16.msra.mxu3 %v2943_v59  ;;  %1037 = vmatpush.bf16.msra.mxu1 %v2671_v61  ;;  %v3707_v59 = vld [vmem:[#allocation5 + $0x314] sm:$0xf0]  ;;  %v2595_v61 = vor.u32 %v3637_v47, %v2592_v48  ;;  %v2928_v38 = vld [vmem:[#allocation5 + $0x398] sm:$0xf0]  ;;  %v3621_v9 = vld [vmem:[#allocation5 + $0x6c] sm:$0xf] }
  0x6e   :  { %1050 = vmatpush.bf16.msra.mxu2 %v2799_v1  ;;  %v2576_v1 = vld [vmem:[#allocation5 + $0xd8] sm:$0xf0]  ;;  %v2863_v5 = vor.u32 %v3707_v59, %v2862_v58  ;;  %v3653_v42 = vld [vmem:[#allocation5 + $0x16c] sm:$0xf]  ;;  %v2931_v46 = vor.u32 %v3721_v37, %v2928_v38  ;;  %v3758_v37 = vld [vmem:[#allocation8 + $0xcc] sm:$0xf0] }
  0x6f   :  { %v2528_v41 = vld [vmem:[#allocation5 + $0x78] sm:$0xf0]  ;;  %v3685_v44 = vld [vmem:[#allocation5 + $0x26c] sm:$0xf]  ;;  %v3194_v38 = vld [vmem:[#allocation8 + $0x1c0] sm:$0xf] }
  0x70   :  { %1025 = vmatpush.bf16.msra.mxu0 %v2527_v12  ;;  %v2579_v12 = vor.u32 %v3633_v0, %v2576_v1  ;;  %v2784_v45 = vld [vmem:[#allocation5 + $0x278] sm:$0xf0]  ;;  %v2531_v47 = vor.u32 %v3621_v9, %v2528_v41  ;;  %v3717_v48 = vld [vmem:[#allocation5 + $0x36c] sm:$0xf]  ;;  %v3050_v9 = vld [vmem:[#allocation8 + $0xa0] sm:$0xf] }
  0x71   :  { %1063 = vmatpush.bf16.msra.mxu3 %v2927_v11  ;;  %1038 = vmatpush.bf16.msra.mxu1 %v2655_v13  ;;  %v915_v11 = vsel %vm904_vm0, %v775_v62, 0  ;;  %v3729_v13 = vld [vmem:[#allocation5 + $0x3cc] sm:$0xf]  ;;  %v2912_v49 = vld [vmem:[#allocation5 + $0x378] sm:$0xf0]  ;;  %v2787_v51 = vor.u32 %v3685_v44, %v2784_v45 }
  0x72   :  { %1051 = vmatpush.bf16.msra.mxu2 %v2783_v17  ;;  %v3629_v17 = vld [vmem:[#allocation5 + $0xac] sm:$0xf]  ;;  %v2512_v54 = vld [vmem:[#allocation5 + $0x58] sm:$0xf0]  ;;  %v3754_v41 = vld [vmem:[#allocation8 + $0xac] sm:$0xf0] }
  0x73   :  { %v3617_v52 = vld [vmem:[#allocation5 + $0x4c] sm:$0xf]  ;;  %v2768_v59 = vld [vmem:[#allocation5 + $0x258] sm:$0xf0]  ;;  %v3786_v44 = vld [vmem:[#allocation8 + $0x1ac] sm:$0xf0]  ;;  %v3051_v45 = vor.u32 %v3754_v41, %v3050_v9 }
  0x74   :  { %1026 = vmatpush.bf16.msra.mxu0 %v2511_v24  ;;  %v2563_v24 = vor.u32 %v3629_v17, %v2560_v18  ;;  %v3681_v58 = vld [vmem:[#allocation5 + $0x24c] sm:$0xf]  ;;  %v2496_v4 = vld [vmem:[#allocation5 + $0x38] sm:$0xf0]  ;;  %v3036_v9 = vld [vmem:[#allocation8 + $0x90] sm:$0xf0] }
  0x75   :  { %1064 = vmatpush.bf16.msra.mxu3 %v2911_v23  ;;  %1039 = vmatpush.bf16.msra.mxu1 %v2639_v25  ;;  %v2963_v23 = vor.u32 %v3729_v13, %v2960_v14  ;;  %v3725_v25 = vld [vmem:[#allocation5 + $0x3ac] sm:$0xf]  ;;  %v2771_v0 = vor.u32 %v3681_v58, %v2768_v59  ;;  %v2624_v6 = vld [vmem:[#allocation5 + $0x138] sm:$0xf0]  ;;  %v3742_v58 = vld [vmem:[#allocation8 + $0x4c] sm:$0xf0] }
  0x76   :  { %1052 = vmatpush.bf16.msra.mxu2 %v2767_v29  ;;  %v3625_v29 = vld [vmem:[#allocation5 + $0x8c] sm:$0xf]  ;;  %v2752_v10 = vld [vmem:[#allocation5 + $0x238] sm:$0xf0]  ;;  %v3130_v59 = vld [vmem:[#allocation8 + $0x140] sm:$0xf] }
  0x77   :  { %v2547_v36 = vor.u32 %v3625_v29, %v2544_v30  ;;  %v3713_v62 = vld [vmem:[#allocation5 + $0x34c] sm:$0xf]  ;;  %v2880_v14 = vld [vmem:[#allocation5 + $0x338] sm:$0xf0]  ;;  %v3210_v29 = vld [vmem:[#allocation8 + $0x1e0] sm:$0xf] }
  0x78   :  { %1027 = vmatpush.bf16.msra.mxu0 %v2495_v39  ;;  %v2675_v39 = vor.u32 %v3657_v31, %v2672_v32  ;;  %v3613_v1 = vld [vmem:[#allocation5 + $0x2c] sm:$0xf]  ;;  %v2480_v18 = vld [vmem:[#allocation5 + $0x18] sm:$0xf0]  ;;  %v3794_v30 = vld [vmem:[#allocation8 + $0x1ec] sm:$0xf0] }
  0x79   :  { %1065 = vmatpush.bf16.msra.mxu3 %v2895_v35  ;;  %1040 = vmatpush.bf16.msra.mxu1 %v2623_v40  ;;  %v2947_v35 = vor.u32 %v3725_v25, %v2944_v26  ;;  %v2803_v40 = vor.u32 %v3689_v33, %v2800_v34  ;;  %v3677_v8 = vld [vmem:[#allocation5 + $0x22c] sm:$0xf]  ;;  %v2608_v20 = vld [vmem:[#allocation5 + $0x118] sm:$0xf0]  ;;  %v3762_v25 = vld [vmem:[#allocation8 + $0xec] sm:$0xf0]  ;;  %v3211_v34 = vor.u32 %v3794_v30, %v3210_v29 }
  0x7a   :  { %1053 = vmatpush.bf16.msra.mxu2 %v2751_v43  ;;  %v2656_v43 = vld [vmem:[#allocation5 + $0x178] sm:$0xf0]  ;;  %v3709_v13 = vld [vmem:[#allocation5 + $0x32c] sm:$0xf]  ;;  %v3196_v29 = vld [vmem:[#allocation8 + $0x1d0] sm:$0xf0] }
  0x7b   :  { %v3609_v17 = vld [vmem:[#allocation5 + $0xc] sm:$0xf]  ;;  %v2736_v22 = vld [vmem:[#allocation5 + $0x218] sm:$0xf0] }
  0x7c   :  { %1028 = vmatpush.bf16.msra.mxu0 %v2479_v55  ;;  %v3649_v55 = vld [vmem:[#allocation5 + $0x14c] sm:$0xf] }
  0x7d   :  { %1066 = vmatpush.bf16.msra.mxu3 %v2879_v50  ;;  %1041 = vmatpush.bf16.msra.mxu1 %v2607_v56  ;;  %v2659_v50 = vor.u32 %v3653_v42, %v2656_v43  ;;  %v2640_v56 = vld [vmem:[#allocation5 + $0x158] sm:$0xf0]  ;;  %v3641_v19 = vld [vmem:[#allocation5 + $0x10c] sm:$0xf]  ;;  %v3178_v43 = vld [vmem:[#allocation8 + $0x1a0] sm:$0xf] }
  0x7e   :  { %1054 = vmatpush.bf16.msra.mxu2 %v2735_v60  ;;  %v2915_v60 = vor.u32 %v3717_v48, %v2912_v49  ;;  %v3673_v21 = vld [vmem:[#allocation5 + $0x20c] sm:$0xf]  ;;  %v2611_v31 = vor.u32 %v3641_v19, %v2608_v20  ;;  %v3179_v48 = vor.u32 %v3786_v44, %v3178_v43  ;;  %v3782_v49 = vld [vmem:[#allocation8 + $0x18c] sm:$0xf0]  ;;  %v3212_v19 = vld [vmem:[#allocation8 + $0x1f0] sm:$0xf0] }
  0x7f   :  { %1029 = vmatmul.bf16.vlgmr.msra.gmra.mxu0 %v4159_v2  ;;  %v3705_v26 = vld [vmem:[#allocation5 + $0x30c] sm:$0xf]  ;;  %v2739_v32 = vor.u32 %v3673_v21, %v2736_v22  ;;  %v3756_v22 = vld [vmem:[#allocation8 + $0xc4] sm:$0xf]  ;;  %v3814_v43 = vld [vmem:[#allocation8 + $0x28c] sm:$0xf0] }
  0x80   :  { %1073 = vmatpush.bf16.msrb.mxu0 %v2595_v61  ;;  %1042 = vmatmul.bf16.vlgmr.msra.gmra.mxu1 %v4164_v7  ;;  %v2515_v61 = vor.u32 %v3617_v52, %v2512_v54  ;;  %v3746_v52 = vld [vmem:[#allocation8 + $0x6c] sm:$0xf0]  ;;  %v3780_v44 = vld [vmem:[#allocation8 + $0x184] sm:$0xf] }
  0x81   :  { %1086 = vmatpush.bf16.msrb.mxu1 %v2723_v63  ;;  %1067 = vmatpush.bf16.msra.mxu3 %v2863_v5  ;;  %v2896_v63 = vld [vmem:[#allocation5 + $0x358] sm:$0xf0]  ;;  %v3645_v5 = vld [vmem:[#allocation5 + $0x12c] sm:$0xf]  ;;  %v3778_v54 = vld [vmem:[#allocation8 + $0x16c] sm:$0xf0] }
  0x82   :  { %1099 = vmatpush.bf16.msrb.mxu2 %v2851_v57  ;;  %v2643_v57 = vor.u32 %v3649_v55, %v2640_v56  ;;  %v3002_v56 = vld [vmem:[#allocation8 + $0x40] sm:$0xf] }
  0x83   :  { %1055 = vmatmul.bf16.vlgmr.msra.gmra.mxu2 %v4156_v53 }
  0x84   :  { %1074 = vmatpush.bf16.msrb.mxu0 %v2579_v12  ;;  %2966 = vmatmul.msk.bf16.vlgmr.msra.gmra.mxu3 %vm900_vm1, %v4161_v3  ;;  %v2499_v12 = vor.u32 %v3613_v1, %v2496_v4  ;;  %v3770_v1 = vld [vmem:[#allocation8 + $0x12c] sm:$0xf0] }
  0x85   :  { %1112 = vmatpush.bf16.msrb.mxu3 %v915_v11  ;;  %1087 = vmatpush.bf16.msrb.mxu1 %v2707_v15  ;;  %v2899_v11 = vor.u32 %v3713_v62, %v2896_v63  ;;  %v2627_v15 = vor.u32 %v3645_v5, %v2624_v6  ;;  %v2986_v62 = vld [vmem:[#allocation8 + $0x20] sm:$0xf]  ;;  %v3738_v63 = vld [vmem:[#allocation8 + $0x2c] sm:$0xf0] }
  0x86   :  { %1100 = vmatpush.bf16.msrb.mxu2 %v2835_v16  ;;  %v2755_v16 = vor.u32 %v3677_v8, %v2752_v10  ;;  %v2987_v4 = vor.u32 %v3738_v63, %v2986_v62  ;;  %v2970_v5 = vld [vmem:[#allocation8] sm:$0xf]  ;;  %v3734_v6 = vld [vmem:[#allocation8 + $0xc] sm:$0xf0]  ;;  %v3760_v8 = vld [vmem:[#allocation8 + $0xe4] sm:$0xf] }
  0x87   :  { %v3258_v63 = vld [vmem:[#allocation8 + $0x240] sm:$0xf] }
  0x88   :  { %1075 = vmatpush.bf16.msrb.mxu0 %v2563_v24  ;;  %v3082_v24 = vld [vmem:[#allocation8 + $0xe0] sm:$0xf] }
  0x89   :  { %1113 = vmatpush.bf16.msrb.mxu3 %v2963_v23  ;;  %1088 = vmatpush.bf16.msrb.mxu1 %v2691_v27  ;;  %v2883_v23 = vor.u32 %v3709_v13, %v2880_v14  ;;  %v2483_v27 = vor.u32 %v3609_v17, %v2480_v18  ;;  %v3083_v33 = vor.u32 %v3762_v25, %v3082_v24  ;;  %v3766_v13 = vld [vmem:[#allocation8 + $0x10c] sm:$0xf0]  ;;  %v3338_v14 = vld [vmem:[#allocation8 + $0x2e0] sm:$0xf]  ;;  %v3792_v18 = vld [vmem:[#allocation8 + $0x1e4] sm:$0xf] }
  0x8a   :  { %1101 = vmatpush.bf16.msrb.mxu2 %v2819_v28  ;;  %v2864_v28 = vld [vmem:[#allocation5 + $0x318] sm:$0xf0]  ;;  %v3215_v24 = vor.u32 %v3792_v18, %v3212_v19  ;;  %v3322_v25 = vld [vmem:[#allocation8 + $0x2c0] sm:$0xf] }
  0x8c   :  { %1076 = vmatpush.bf16.msrb.mxu0 %v2547_v36  ;;  %v3066_v36 = vld [vmem:[#allocation8 + $0xc0] sm:$0xf] }
  0x8d   :  { %1114 = vmatpush.bf16.msrb.mxu3 %v2947_v35  ;;  %1089 = vmatpush.bf16.msrb.mxu1 %v2675_v39  ;;  %v2867_v35 = vor.u32 %v3705_v26, %v2864_v28  ;;  %v3790_v39 = vld [vmem:[#allocation8 + $0x1cc] sm:$0xf0] }
  0x8e   :  { %1102 = vmatpush.bf16.msrb.mxu2 %v2803_v40  ;;  %v3067_v40 = vor.u32 %v3758_v37, %v3066_v36  ;;  %v3195_v42 = vor.u32 %v3790_v39, %v3194_v38  ;;  %v3822_v26 = vld [vmem:[#allocation8 + $0x2cc] sm:$0xf0]  ;;  %v3784_v36 = vld [vmem:[#allocation8 + $0x1a4] sm:$0xf]  ;;  %v3180_v38 = vld [vmem:[#allocation8 + $0x1b0] sm:$0xf0] }
  0x8f   :  { %v3323_v28 = vor.u32 %v3822_v26, %v3322_v25  ;;  %v3183_v41 = vor.u32 %v3784_v36, %v3180_v38 }
  0x90   :  { %1077 = vmatpush.bf16.msrb.mxu0 %v2531_v47  ;;  %v3750_v47 = vld [vmem:[#allocation8 + $0x8c] sm:$0xf0] }
  0x91   :  { %1115 = vmatpush.bf16.msrb.mxu3 %v2931_v46  ;;  %1090 = vmatpush.bf16.msrb.mxu1 %v2659_v50  ;;  %v3034_v46 = vld [vmem:[#allocation8 + $0x80] sm:$0xf] }
  0x92   :  { %1103 = vmatpush.bf16.msrb.mxu2 %v2787_v51  ;;  %v3035_v50 = vor.u32 %v3750_v47, %v3034_v46  ;;  %v3018_v51 = vld [vmem:[#allocation8 + $0x60] sm:$0xf]  ;;  %v3164_v47 = vld [vmem:[#allocation8 + $0x190] sm:$0xf0] }
  0x93   :  { %v3019_v55 = vor.u32 %v3746_v52, %v3018_v51  ;;  %v3274_v52 = vld [vmem:[#allocation8 + $0x260] sm:$0xf] }
  0x94   :  { %1078 = vmatpush.bf16.msrb.mxu0 %v2515_v61  ;;  %v3003_v61 = vor.u32 %v3742_v58, %v3002_v56 }
  0x95   :  { %1116 = vmatpush.bf16.msrb.mxu3 %v2915_v60  ;;  %1091 = vmatpush.bf16.msrb.mxu1 %v2643_v57  ;;  %v3774_v60 = vld [vmem:[#allocation8 + $0x14c] sm:$0xf0] }
  0x96   :  { %1104 = vmatpush.bf16.msrb.mxu2 %v2771_v0  ;;  %v3131_v57 = vor.u32 %v3774_v60, %v3130_v59  ;;  %v3114_v0 = vld [vmem:[#allocation8 + $0x120] sm:$0xf]  ;;  %v3004_v59 = vld [vmem:[#allocation8 + $0x50] sm:$0xf0] }
  0x97   :  { %v3115_v10 = vor.u32 %v3770_v1, %v3114_v0  ;;  %v3772_v0 = vld [vmem:[#allocation8 + $0x144] sm:$0xf] }
  0x98   :  { %1079 = vmatpush.bf16.msrb.mxu0 %v2499_v12  ;;  %v3098_v12 = vld [vmem:[#allocation8 + $0x100] sm:$0xf] }
  0x99   :  { %1117 = vmatpush.bf16.msrb.mxu3 %v2899_v11  ;;  %1092 = vmatpush.bf16.msrb.mxu1 %v2627_v15  ;;  %v3084_v11 = vld [vmem:[#allocation8 + $0xf0] sm:$0xf0]  ;;  %v3826_v15 = vld [vmem:[#allocation8 + $0x2ec] sm:$0xf0]  ;;  %v3099_v21 = vor.u32 %v3766_v13, %v3098_v12 }
  0x9a   :  { %1105 = vmatpush.bf16.msrb.mxu2 %v2755_v16  ;;  %v2971_v16 = vor.u32 %v3734_v6, %v2970_v5  ;;  %v3339_v17 = vor.u32 %v3826_v15, %v3338_v14  ;;  %v3087_v20 = vor.u32 %v3760_v8, %v3084_v11  ;;  %v3132_v8 = vld [vmem:[#allocation8 + $0x150] sm:$0xf0]  ;;  %v3242_v15 = vld [vmem:[#allocation8 + $0x220] sm:$0xf] }
  0x9b   :  { %v2988_v11 = vld [vmem:[#allocation8 + $0x30] sm:$0xf0]  ;;  %v3135_v12 = vor.u32 %v3772_v0, %v3132_v8 }
  0x9c   :  { %1080 = vmatpush.bf16.msrb.mxu0 %v2483_v27  ;;  %v3788_v27 = vld [vmem:[#allocation8 + $0x1c4] sm:$0xf] }
  0x9d   :  { %1118 = vmatpush.bf16.msrb.mxu3 %v2883_v23  ;;  %1093 = vmatpush.bf16.msrb.mxu1 %v2611_v31  ;;  %v3068_v23 = vld [vmem:[#allocation8 + $0xd0] sm:$0xf0]  ;;  %v3752_v31 = vld [vmem:[#allocation8 + $0xa4] sm:$0xf] }
  0x9e   :  { %1106 = vmatpush.bf16.msrb.mxu2 %v2739_v32  ;;  %v3071_v30 = vor.u32 %v3756_v22, %v3068_v23  ;;  %v3052_v32 = vld [vmem:[#allocation8 + $0xb0] sm:$0xf0]  ;;  %v3732_v22 = vld [vmem:[#allocation8 + $0x4] sm:$0xf] }
  0x9f   :  { %1081 = vmatmul.bf16.vlgmr.msrb.gmra.mxu0 %v4159_v2  ;;  %v3162_v2 = vld [vmem:[#allocation8 + $0x180] sm:$0xf]  ;;  %v3055_v39 = vor.u32 %v3752_v31, %v3052_v32  ;;  %v2972_v23 = vld [vmem:[#allocation8 + $0x10] sm:$0xf0]  ;;  %v3798_v31 = vld [vmem:[#allocation8 + $0x20c] sm:$0xf0] }
  0xa0   :  { %1915 = vmatpush.bf16.msra.mxu0 %v3083_v33  ;;  %1094 = vmatmul.bf16.vlgmr.msrb.gmra.mxu1 %v4164_v7  ;;  %v3163_v7 = vor.u32 %v3782_v49, %v3162_v2  ;;  %v3199_v33 = vor.u32 %v3788_v27, %v3196_v29  ;;  %v3744_v2 = vld [vmem:[#allocation8 + $0x64] sm:$0xf]  ;;  %v3020_v49 = vld [vmem:[#allocation8 + $0x70] sm:$0xf0]  ;;  %v3090_v27 = vld [vmem:[#allocation8 + $0xe8] sm:$0xf] }
  0xa1   :  { %1928 = vmatpush.bf16.msra.mxu1 %v3211_v34  ;;  %1119 = vmatpush.bf16.msrb.mxu3 %v2867_v35  ;;  %v3306_v34 = vld [vmem:[#allocation8 + $0x2a0] sm:$0xf]  ;;  %v3818_v35 = vld [vmem:[#allocation8 + $0x2ac] sm:$0xf0]  ;;  %v3023_v56 = vor.u32 %v3744_v2, %v3020_v49  ;;  %v3764_v32 = vld [vmem:[#allocation8 + $0x104] sm:$0xf] }
  0xa2   :  { %1107 = vmatmul.bf16.vlgmr.msrb.gmra.mxu2 %v4156_v53  ;;  %v3146_v53 = vld [vmem:[#allocation8 + $0x160] sm:$0xf]  ;;  %v3307_v37 = vor.u32 %v3818_v35, %v3306_v34  ;;  %v2975_v34 = vor.u32 %v3732_v22, %v2972_v23  ;;  %v3276_v22 = vld [vmem:[#allocation8 + $0x270] sm:$0xf0] }
  0xa3   :  { %1941 = vmatpush.bf16.msra.mxu2 %v3339_v17  ;;  %v3768_v17 = vld [vmem:[#allocation8 + $0x124] sm:$0xf]  ;;  %v3450_v49 = vld [vmem:[#allocation8 + $0x3c0] sm:$0xf] }
  0xa4   :  { %1916 = vmatpush.bf16.msra.mxu0 %v3067_v40  ;;  %2967 = vmatmul.msk.bf16.vlgmr.msrb.gmra.mxu3 %vm900_vm1, %v4161_v3  ;;  %v3147_v3 = vor.u32 %v3778_v54, %v3146_v53  ;;  %v3748_v40 = vld [vmem:[#allocation8 + $0x84] sm:$0xf] }
  0xa5   :  { %1929 = vmatpush.bf16.msra.mxu1 %v3195_v42  ;;  %v3290_v42 = vld [vmem:[#allocation8 + $0x280] sm:$0xf]  ;;  %v3776_v54 = vld [vmem:[#allocation8 + $0x164] sm:$0xf] }
  0xa6   :  { %v3291_v46 = vor.u32 %v3814_v43, %v3290_v42 }
  0xa7   :  { %1942 = vmatpush.bf16.msra.mxu2 %v3323_v28  ;;  %v3763_v28 = vld [vmem:[#allocation8 + $0xf4] sm:$0xf0] }
  0xa8   :  { %1917 = vmatpush.bf16.msra.mxu0 %v3051_v45  ;;  %v4191_v45 = vld [vmem:[#allocation7] sm:$0xf]  ;;  %v3091_v42 = vor.u32 %v3763_v28, %v3090_v27  ;;  %v3743_v27 = vld [vmem:[#allocation8 + $0x54] sm:$0xf0]  ;;  %v3386_v28 = vld [vmem:[#allocation8 + $0x340] sm:$0xf] }
  0xa9   :  { %1930 = vmatpush.bf16.msra.mxu1 %v3179_v48  ;;  %v3039_v48 = vor.u32 %v3748_v40, %v3036_v9  ;;  %v262_v51 = vperm.slane %v4191_v45, 0  ;;  %v3858_v40 = vld [vmem:[#allocation8 + $0x3ec] sm:$0xf0]  ;;  %v3824_v9 = vld [vmem:[#allocation8 + $0x2e4] sm:$0xf]  ;;  %v263_v0 = vperm.slane %v4191_v45, 1 }
  0xab   :  { %1943 = vmatpush.bf16.msra.mxu2 %v3307_v37  ;;  %v3100_v37 = vld [vmem:[#allocation8 + $0x110] sm:$0xf0] }
  0xac   :  { %1918 = vmatpush.bf16.msra.mxu0 %v3035_v50  ;;  %v3167_v50 = vor.u32 %v3780_v44, %v3164_v47  ;;  %v3103_v38 = vor.u32 %v3764_v32, %v3100_v37  ;;  %v3340_v44 = vld [vmem:[#allocation8 + $0x2f0] sm:$0xf0]  ;;  %v3759_v47 = vld [vmem:[#allocation8 + $0xd4] sm:$0xf0] }
  0xad   :  { %1931 = vmatpush.bf16.msra.mxu1 %v3163_v7  ;;  %v3810_v7 = vld [vmem:[#allocation8 + $0x26c] sm:$0xf0]  ;;  %v3343_v2 = vor.u32 %v3824_v9, %v3340_v44  ;;  %v3800_v44 = vld [vmem:[#allocation8 + $0x224] sm:$0xf] }
  0xae   :  { %v3275_v53 = vor.u32 %v3810_v7, %v3274_v52  ;;  %v3324_v7 = vld [vmem:[#allocation8 + $0x2d0] sm:$0xf0] }
  0xaf   :  { %1944 = vmatpush.bf16.msra.mxu2 %v3291_v46  ;;  %v3074_v46 = vld [vmem:[#allocation8 + $0xc8] sm:$0xf] }
  0xb0   :  { %1919 = vmatpush.bf16.msra.mxu0 %v3019_v55  ;;  %v3148_v55 = vld [vmem:[#allocation8 + $0x170] sm:$0xf0] }
  0xb1   :  { %1932 = vmatpush.bf16.msra.mxu1 %v3147_v3  ;;  %v3740_v3 = vld [vmem:[#allocation8 + $0x44] sm:$0xf]  ;;  %v3151_v60 = vor.u32 %v3776_v54, %v3148_v55  ;;  %v3058_v54 = vld [vmem:[#allocation8 + $0xa8] sm:$0xf]  ;;  %v3755_v55 = vld [vmem:[#allocation8 + $0xb4] sm:$0xf0] }
  0xb2   :  { %v3007_v5 = vor.u32 %v3740_v3, %v3004_v59  ;;  %v3850_v3 = vld [vmem:[#allocation8 + $0x3ac] sm:$0xf0]  ;;  %v3816_v59 = vld [vmem:[#allocation8 + $0x2a4] sm:$0xf] }
  0xb3   :  { %1945 = vmatpush.bf16.msra.mxu2 %v3275_v53  ;;  %v3075_v53 = vor.u32 %v3759_v47, %v3074_v46  ;;  %v2978_v47 = vld [vmem:[#allocation8 + $0x8] sm:$0xf] }
  0xb4   :  { %1920 = vmatpush.bf16.msra.mxu0 %v3003_v61 }
  0xb5   :  { %1933 = vmatpush.bf16.msra.mxu1 %v3131_v57  ;;  %v3806_v57 = vld [vmem:[#allocation8 + $0x24c] sm:$0xf0] }
  0xb6   :  { %v3259_v6 = vor.u32 %v3806_v57, %v3258_v63  ;;  %v3042_v63 = vld [vmem:[#allocation8 + $0x88] sm:$0xf]  ;;  %v3751_v57 = vld [vmem:[#allocation8 + $0x94] sm:$0xf0] }
  0xb8   :  { %1921 = vmatpush.bf16.msra.mxu0 %v2987_v4  ;;  %1946 = vmatpush.bf16.msra.mxu2 %v3259_v6  ;;  %v3812_v6 = vld [vmem:[#allocation8 + $0x284] sm:$0xf] }
  0xb9   :  { %1934 = vmatpush.bf16.msra.mxu1 %v3115_v10  ;;  %v3736_v10 = vld [vmem:[#allocation8 + $0x24] sm:$0xf] }
  0xba   :  { %v2991_v19 = vor.u32 %v3736_v10, %v2988_v11  ;;  %v3292_v10 = vld [vmem:[#allocation8 + $0x290] sm:$0xf0]  ;;  %v3043_v11 = vor.u32 %v3751_v57, %v3042_v63 }
  0xbc   :  { %1922 = vmatpush.bf16.msra.mxu0 %v2971_v16  ;;  %v3802_v16 = vld [vmem:[#allocation8 + $0x22c] sm:$0xf0] }
  0xbd   :  { %1935 = vmatpush.bf16.msra.mxu1 %v3099_v21  ;;  %v3116_v21 = vld [vmem:[#allocation8 + $0x130] sm:$0xf0] }
  0xbe   :  { %v3119_v25 = vor.u32 %v3768_v17, %v3116_v21  ;;  %v3402_v17 = vld [vmem:[#allocation8 + $0x360] sm:$0xf]  ;;  %v3808_v21 = vld [vmem:[#allocation8 + $0x264] sm:$0xf] }
  0xc0   :  { %1967 = vmatpush.bf16.msrb.mxu0 %v3087_v20  ;;  %v926_v58 = vpop.f32.mrf.mxu0  ;;  %v3243_v20 = vor.u32 %v3802_v16, %v3242_v15  ;;  %v3747_v16 = vld [vmem:[#allocation8 + $0x74] sm:$0xf0] }
  0xc1   :  { %1980 = vmatpush.bf16.msrb.mxu1 %v3215_v24  ;;  %v927_v61 = vadd.f32 %v926_v58, %v262_v51  ;;  %v3820_v51 = vld [vmem:[#allocation8 + $0x2c4] sm:$0xf]  ;;  %v3434_v58 = vld [vmem:[#allocation8 + $0x3a0] sm:$0xf] }
  0xc2   :  { %1947 = vmatpush.bf16.msra.mxu2 %v3243_v20 }
  0xc3   :  { %v939_v62 = vpop.f32.mrf.mxu1 }
  0xc4   :  { %1968 = vmatpush.bf16.msrb.mxu0 %v3071_v30  ;;  %v940_v1 = vadd.f32 %v939_v62, %v927_v61  ;;  %v3226_v30 = vld [vmem:[#allocation8 + $0x200] sm:$0xf]  ;;  %v3308_v61 = vld [vmem:[#allocation8 + $0x2b0] sm:$0xf0]  ;;  %v3059_v62 = vor.u32 %v3755_v55, %v3058_v54  ;;  %v3761_v54 = vld [vmem:[#allocation8 + $0xec] sm:$0xf] }
  0xc5   :  { %1981 = vmatpush.bf16.msrb.mxu1 %v3199_v33  ;;  %v3227_v36 = vor.u32 %v3798_v31, %v3226_v30  ;;  %v3804_v30 = vld [vmem:[#allocation8 + $0x244] sm:$0xf]  ;;  %v3092_v55 = vld [vmem:[#allocation8 + $0xf8] sm:$0xf0] }
  0xc6   :  { %v952_v4 = vpop.f32.mrf.mxu2 }
  0xc7   :  { %v953_v13 = vadd.f32 %v952_v4, %v940_v1  ;;  %v965_v14 = vpop.f32.mrf.mxu3  ;;  %1948 = vmatpush.bf16.msra.mxu2 %v3227_v36  ;;  %v3311_v1 = vor.u32 %v3816_v59, %v3308_v61  ;;  %v3418_v4 = vld [vmem:[#allocation8 + $0x380] sm:$0xf] }
  0xc8   :  { %1969 = vmatpush.bf16.msrb.mxu0 %v3055_v39  ;;  %v928_v24 = vpop.f32.mrf.mxu0  ;;  %v3466_v39 = vld [vmem:[#allocation8 + $0x3e0] sm:$0xf] }
  0xc9   :  { %1982 = vmatpush.bf16.msrb.mxu1 %v3183_v41  ;;  %v966_v18 = vadd.f32 %v965_v14, %v953_v13  ;;  %v3467_v43 = vor.u32 %v3858_v40, %v3466_v39  ;;  %v3026_v13 = vld [vmem:[#allocation8 + $0x68] sm:$0xf]  ;;  %v3295_v14 = vor.u32 %v3812_v6, %v3292_v10  ;;  %v3739_v39 = vld [vmem:[#allocation8 + $0x34] sm:$0xf0]  ;;  %v3468_v10 = vld [vmem:[#allocation8 + $0x3f0] sm:$0xf0] }
  0xca   :  { %v3027_v24 = vor.u32 %v3747_v16, %v3026_v13  ;;  %v3791_v6 = vld [vmem:[#allocation8 + $0x1d4] sm:$0xf0]  ;;  %v3452_v16 = vld [vmem:[#allocation8 + $0x3d0] sm:$0xf0] }
  0xcb   :  { %v1125_v26 = vmul.f32 0.2, %v966_v18  ;;  %v941_v29 = vpop.f32.mrf.mxu1  ;;  %1954 = vmatpush.bf16.msra.mxu3 %v3467_v43  ;;  %1993 = vmatpush.bf16.msrb.mxu2 %v3343_v2  ;;  %v3834_v43 = vld [vmem:[#allocation8 + $0x32c] sm:$0xf0]  ;;  %v3244_v2 = vld [vmem:[#allocation8 + $0x230] sm:$0xf0] }
  0xcc   :  { %1970 = vmatpush.bf16.msrb.mxu0 %v3039_v48  ;;  %v3838_v29 = vld [vmem:[#allocation8 + $0x34c] sm:$0xf0] }
  0xcd   :  { %1983 = vmatpush.bf16.msrb.mxu1 %v3167_v50  ;;  %v1129_v33 = vmax.f32 %v966_v18, %v1125_v26  ;;  %v3854_v50 = vld [vmem:[#allocation8 + $0x3cc] sm:$0xf0]  ;;  %v3010_v26 = vld [vmem:[#allocation8 + $0x48] sm:$0xf]  ;;  %v3387_v32 = vor.u32 %v3838_v29, %v3386_v28  ;;  %v3783_v29 = vld [vmem:[#allocation8 + $0x194] sm:$0xf0] }
  0xce   :  { %v954_v35 = vpop.f32.mrf.mxu2  ;;  %v3451_v52 = vor.u32 %v3854_v50, %v3450_v49  ;;  %v3842_v18 = vld [vmem:[#allocation8 + $0x36c] sm:$0xf0]  ;;  %v3735_v50 = vld [vmem:[#allocation8 + $0x14] sm:$0xf0]  ;;  %v3170_v28 = vld [vmem:[#allocation8 + $0x188] sm:$0xf] }
  0xcf   :  { %v4194_v41 = vpack.c.bf16 %v1129_v33, %v1129_v33  ;;  %v967_v48 = vpop.f32.mrf.mxu3  ;;  %v3403_v20 = vor.u32 %v3842_v18, %v3402_v17  ;;  %v3260_v33 = vld [vmem:[#allocation8 + $0x250] sm:$0xf0]  ;;  %v3011_v35 = vor.u32 %v3743_v27, %v3010_v26  ;;  %v2979_v63 = vor.u32 %v3735_v50, %v2978_v47  ;;  %v3138_v50 = vld [vmem:[#allocation8 + $0x148] sm:$0xf] }
  0xd0   :  { %1971 = vmatpush.bf16.msrb.mxu0 %v3023_v56  ;;  %v3327_v56 = vor.u32 %v3820_v51, %v3324_v7  ;;  %1955 = vmatpush.bf16.msra.mxu3 %v3451_v52  ;;  %v3263_v37 = vor.u32 %v3804_v30, %v3260_v33  ;;  %v3218_v51 = vld [vmem:[#allocation8 + $0x1e8] sm:$0xf]  ;;  %v3795_v52 = vld [vmem:[#allocation8 + $0x1f4] sm:$0xf0]  ;;  %v3247_v7 = vor.u32 %v3800_v44, %v3244_v2  ;;  %v3749_v30 = vld [vmem:[#allocation8 + $0x8c] sm:$0xf] }
  0xd1   :  { %1984 = vmatpush.bf16.msrb.mxu1 %v3151_v60  ;;  %1923 = vmatmul.bf16.vlgmr.msra.gmra.mxu0 %v4194_v41  ;;  %v3435_v60 = vor.u32 %v3850_v3, %v3434_v58  ;;  %v3830_v58 = vld [vmem:[#allocation8 + $0x30c] sm:$0xf0]  ;;  %v3796_v3 = vld [vmem:[#allocation8 + $0x204] sm:$0xf]  ;;  %v3219_v57 = vor.u32 %v3795_v52, %v3218_v51  ;;  %v264_v33 = vperm.slane %v4191_v45, 2 }
  0xd2   :  { %1994 = vmatpush.bf16.msrb.mxu2 %v3327_v56  ;;  %v3354_v56 = vld [vmem:[#allocation8 + $0x300] sm:$0xf]  ;;  %v3404_v47 = vld [vmem:[#allocation8 + $0x370] sm:$0xf0]  ;;  %v3775_v51 = vld [vmem:[#allocation8 + $0x154] sm:$0xf0] }
  0xd3   :  { %v3355_v61 = vor.u32 %v3830_v58, %v3354_v56  ;;  %v3388_v56 = vld [vmem:[#allocation8 + $0x350] sm:$0xf0]  ;;  %v3139_v58 = vor.u32 %v3775_v51, %v3138_v50  ;;  %v3172_v50 = vld [vmem:[#allocation8 + $0x198] sm:$0xf0]  ;;  %v265_v51 = vperm.slane %v4191_v45, 3 }
  0xd4   :  { %1972 = vmatpush.bf16.msrb.mxu0 %v3007_v5  ;;  %v3846_v5 = vld [vmem:[#allocation8 + $0x38c] sm:$0xf0]  ;;  %1956 = vmatpush.bf16.msra.mxu3 %v3435_v60  ;;  %v3140_v45 = vld [vmem:[#allocation8 + $0x158] sm:$0xf0] }
  0xd5   :  { %1985 = vmatpush.bf16.msrb.mxu1 %v3135_v12  ;;  %v3419_v8 = vor.u32 %v3846_v5, %v3418_v4  ;;  %v3095_v4 = vor.u32 %v3761_v54, %v3092_v55  ;;  %v3202_v5 = vld [vmem:[#allocation8 + $0x1c8] sm:$0xf]  ;;  %v3836_v55 = vld [vmem:[#allocation8 + $0x344] sm:$0xf] }
  0xd6   :  { %1995 = vmatpush.bf16.msrb.mxu2 %v3311_v1  ;;  %v3203_v17 = vor.u32 %v3791_v6, %v3202_v5  ;;  %v3832_v5 = vld [vmem:[#allocation8 + $0x324] sm:$0xf]  ;;  %v3372_v6 = vld [vmem:[#allocation8 + $0x330] sm:$0xf0] }
  0xd8   :  { %1973 = vmatpush.bf16.msrb.mxu0 %v2991_v19  ;;  %1957 = vmatpush.bf16.msra.mxu3 %v3419_v8 }
  0xd9   :  { %1986 = vmatpush.bf16.msrb.mxu1 %v3119_v25  ;;  %v3279_v25 = vor.u32 %v3808_v21, %v3276_v22  ;;  %v3753_v21 = vld [vmem:[#allocation8 + $0xac] sm:$0xf]  ;;  %v3060_v22 = vld [vmem:[#allocation8 + $0xb8] sm:$0xf0] }
  0xda   :  { %1996 = vmatpush.bf16.msrb.mxu2 %v3295_v14  ;;  %v3063_v27 = vor.u32 %v3753_v21, %v3060_v22  ;;  %v3793_v22 = vld [vmem:[#allocation8 + $0x1ec] sm:$0xf] }
  0xdc   :  { %1974 = vmatpush.bf16.msrb.mxu0 %v2975_v34  ;;  %v978_v12 = vpop.f32.mrf.mxu0  ;;  %1958 = vmatpush.bf16.msra.mxu3 %v3403_v20  ;;  %v3787_v20 = vld [vmem:[#allocation8 + $0x1b4] sm:$0xf0] }
  0xdd   :  { %1987 = vmatpush.bf16.msrb.mxu1 %v3103_v38  ;;  %v979_v15 = vadd.f32 %v978_v12, %v263_v0  ;;  %v991_v19 = vpop.f32.mrf.mxu1  ;;  %v2994_v38 = vld [vmem:[#allocation8 + $0x28] sm:$0xf]  ;;  %v3856_v0 = vld [vmem:[#allocation8 + $0x3e4] sm:$0xf]  ;;  %v3076_v12 = vld [vmem:[#allocation8 + $0xd8] sm:$0xf0] }
  0xde   :  { %1997 = vmatpush.bf16.msrb.mxu2 %v3279_v25  ;;  %v2995_v49 = vor.u32 %v3739_v39, %v2994_v38  ;;  %v3471_v14 = vor.u32 %v3856_v0, %v3468_v10  ;;  %v3436_v25 = vld [vmem:[#allocation8 + $0x3b0] sm:$0xf0]  ;;  %v3154_v38 = vld [vmem:[#allocation8 + $0x168] sm:$0xf]  ;;  %v3779_v39 = vld [vmem:[#allocation8 + $0x174] sm:$0xf0] }
  0xdf   :  { %v992_v23 = vadd.f32 %v991_v19, %v979_v15  ;;  %v3852_v15 = vld [vmem:[#allocation8 + $0x3c4] sm:$0xf]  ;;  %v3186_v19 = vld [vmem:[#allocation8 + $0x1a8] sm:$0xf]  ;;  %v3155_v2 = vor.u32 %v3779_v39, %v3154_v38 }
  0xe0   :  { %2019 = vmatpush.bf16.msra.mxu0 %v3091_v42  ;;  %1959 = vmatpush.bf16.msra.mxu3 %v3387_v32  ;;  %v3370_v42 = vld [vmem:[#allocation8 + $0x320] sm:$0xf]  ;;  %v3187_v26 = vor.u32 %v3787_v20, %v3186_v19  ;;  %v3827_v19 = vld [vmem:[#allocation8 + $0x2f4] sm:$0xf0]  ;;  %v3375_v20 = vor.u32 %v3832_v5, %v3372_v6  ;;  %v3250_v6 = vld [vmem:[#allocation8 + $0x228] sm:$0xf] }
  0xe1   :  { %1975 = vmatmul.bf16.vlgmr.msrb.gmra.mxu0 %v4194_v41  ;;  %v3371_v48 = vor.u32 %v3834_v43, %v3370_v42  ;;  %v3028_v42 = vld [vmem:[#allocation8 + $0x78] sm:$0xf0] }
  0xe2   :  { %1998 = vmatpush.bf16.msrb.mxu2 %v3263_v37 }
  0xe4   :  { %2020 = vmatpush.bf16.msra.mxu0 %v3075_v53  ;;  %v980_v36 = vpop.f32.mrf.mxu0  ;;  %1960 = vmatpush.bf16.msra.mxu3 %v3371_v48 }
  0xe5   :  { %v993_v9 = vpop.f32.mrf.mxu1  ;;  %v3171_v36 = vor.u32 %v3783_v29, %v3170_v28 }
  0xe6   :  { %v1004_v31 = vpop.f32.mrf.mxu2  ;;  %1999 = vmatpush.bf16.msrb.mxu2 %v3247_v7  ;;  %v3745_v9 = vld [vmem:[#allocation8 + $0x6c] sm:$0xf] }
  0xe7   :  { %v1005_v34 = vadd.f32 %v1004_v31, %v992_v23  ;;  %v1017_v40 = vpop.f32.mrf.mxu3  ;;  %v3455_v23 = vor.u32 %v3852_v15, %v3452_v16  ;;  %v3044_v31 = vld [vmem:[#allocation8 + $0x98] sm:$0xf0]  ;;  %v3741_v7 = vld [vmem:[#allocation8 + $0x4c] sm:$0xf]  ;;  %v3767_v15 = vld [vmem:[#allocation8 + $0x114] sm:$0xf0] }
  0xe8   :  { %2021 = vmatpush.bf16.msra.mxu0 %v3059_v62  ;;  %v3228_v62 = vld [vmem:[#allocation8 + $0x210] sm:$0xf0]  ;;  %1961 = vmatpush.bf16.msra.mxu3 %v3355_v61  ;;  %v3047_v37 = vor.u32 %v3749_v30, %v3044_v31  ;;  %v3771_v61 = vld [vmem:[#allocation8 + $0x134] sm:$0xf0]  ;;  %v3733_v16 = vld [vmem:[#allocation8 + $0xc] sm:$0xf] }
  0xe9   :  { %v1018_v46 = vadd.f32 %v1017_v40, %v1005_v34  ;;  %v3231_v8 = vor.u32 %v3796_v3, %v3228_v62  ;;  %v3844_v34 = vld [vmem:[#allocation8 + $0x384] sm:$0xf] }
  0xeb   :  { %v1126_v53 = vmul.f32 0.2, %v1018_v46  ;;  %2000 = vmatpush.bf16.msrb.mxu2 %v3231_v8 }
  0xec   :  { %2022 = vmatpush.bf16.msra.mxu0 %v3043_v11  ;;  %v3757_v11 = vld [vmem:[#allocation8 + $0xcc] sm:$0xf]  ;;  %2006 = vmatpush.bf16.msrb.mxu3 %v3471_v14  ;;  %v3106_v14 = vld [vmem:[#allocation8 + $0x108] sm:$0xf] }
  0xed   :  { %v1130_v59 = vmax.f32 %v1018_v46, %v1126_v53  ;;  %v3079_v18 = vor.u32 %v3757_v11, %v3076_v12  ;;  %v3840_v46 = vld [vmem:[#allocation8 + $0x364] sm:$0xf]  ;;  %v3012_v53 = vld [vmem:[#allocation8 + $0x58] sm:$0xf0] }
  0xee   :  { %v1006_v60 = vpop.f32.mrf.mxu2  ;;  %v3407_v54 = vor.u32 %v3840_v46, %v3404_v47 }
  0xef   :  { %v4199_v1 = vpack.c.bf16 %v1130_v59, %v1130_v59  ;;  %v1019_v13 = vpop.f32.mrf.mxu3  ;;  %v3015_v59 = vor.u32 %v3741_v7, %v3012_v53  ;;  %v3122_v60 = vld [vmem:[#allocation8 + $0x128] sm:$0xf] }
  0xf0   :  { %2023 = vmatpush.bf16.msra.mxu0 %v3027_v24  ;;  %v3848_v24 = vld [vmem:[#allocation8 + $0x3a4] sm:$0xf]  ;;  %2007 = vmatpush.bf16.msrb.mxu3 %v3455_v23  ;;  %v3123_v10 = vor.u32 %v3771_v61, %v3122_v60  ;;  %v3220_v23 = vld [vmem:[#allocation8 + $0x1f8] sm:$0xf0]  ;;  %v3282_v53 = vld [vmem:[#allocation8 + $0x268] sm:$0xf] }
  0xf1   :  { %1936 = vmatmul.bf16.vlgmr.msra.gmra.mxu1 %v4199_v1  ;;  %v3439_v32 = vor.u32 %v3848_v24, %v3436_v25  ;;  %v3107_v24 = vor.u32 %v3767_v15, %v3106_v14  ;;  %v3828_v25 = vld [vmem:[#allocation8 + $0x304] sm:$0xf]  ;;  %v3223_v31 = vor.u32 %v3793_v22, %v3220_v23  ;;  %v3266_v61 = vld [vmem:[#allocation8 + $0x248] sm:$0xf]  ;;  %v3108_v23 = vld [vmem:[#allocation8 + $0x118] sm:$0xf0] }
  0xf2   :  { %2032 = vmatpush.bf16.msra.mxu1 %v3219_v57  ;;  %v2996_v57 = vld [vmem:[#allocation8 + $0x38] sm:$0xf0] }
  0xf4   :  { %2024 = vmatpush.bf16.msra.mxu0 %v3011_v35  ;;  %v3420_v35 = vld [vmem:[#allocation8 + $0x390] sm:$0xf0]  ;;  %2008 = vmatpush.bf16.msrb.mxu3 %v3439_v32  ;;  %v3330_v32 = vld [vmem:[#allocation8 + $0x2c8] sm:$0xf] }
  0xf5   :  { %v3423_v43 = vor.u32 %v3844_v34, %v3420_v35  ;;  %v3823_v34 = vld [vmem:[#allocation8 + $0x2d4] sm:$0xf0]  ;;  %v3789_v35 = vld [vmem:[#allocation8 + $0x1cc] sm:$0xf] }
  0xf6   :  { %2033 = vmatpush.bf16.msra.mxu1 %v3203_v17  ;;  %v2980_v17 = vld [vmem:[#allocation8 + $0x18] sm:$0xf0]  ;;  %v3331_v39 = vor.u32 %v3823_v34, %v3330_v32 }
  0xf7   :  { %v2983_v28 = vor.u32 %v3733_v16, %v2980_v17 }
  0xf8   :  { %2025 = vmatpush.bf16.msra.mxu0 %v2995_v49  ;;  %v3031_v49 = vor.u32 %v3745_v9, %v3028_v42  ;;  %2009 = vmatpush.bf16.msrb.mxu3 %v3423_v43  ;;  %v3314_v9 = vld [vmem:[#allocation8 + $0x2a8] sm:$0xf]  ;;  %v3819_v42 = vld [vmem:[#allocation8 + $0x2b4] sm:$0xf0]  ;;  %v3785_v43 = vld [vmem:[#allocation8 + $0x1ac] sm:$0xf] }
  0xf9   :  { %v3315_v46 = vor.u32 %v3819_v42, %v3314_v9 }
  0xfa   :  { %2034 = vmatpush.bf16.msra.mxu1 %v3187_v26  ;;  %v3356_v26 = vld [vmem:[#allocation8 + $0x310] sm:$0xf0] }
  0xfc   :  { %2026 = vmatpush.bf16.msra.mxu0 %v2979_v63  ;;  %v1030_v40 = vpop.f32.mrf.mxu0  ;;  %v3737_v63 = vld [vmem:[#allocation8 + $0x2c] sm:$0xf]  ;;  %2010 = vmatpush.bf16.msrb.mxu3 %v3407_v54 }
  0xfd   :  { %v1031_v44 = vadd.f32 %v1030_v40, %v264_v33  ;;  %v1043_v48 = vpop.f32.mrf.mxu1  ;;  %v2999_v13 = vor.u32 %v3737_v63, %v2996_v57  ;;  %v3807_v63 = vld [vmem:[#allocation8 + $0x254] sm:$0xf0]  ;;  %v3773_v57 = vld [vmem:[#allocation8 + $0x14c] sm:$0xf] }
  0xfe   :  { %2035 = vmatpush.bf16.msra.mxu1 %v3171_v36  ;;  %v3204_v36 = vld [vmem:[#allocation8 + $0x1d8] sm:$0xf0]  ;;  %v3143_v5 = vor.u32 %v3773_v57, %v3140_v45  ;;  %v3378_v57 = vld [vmem:[#allocation8 + $0x328] sm:$0xf]  ;;  %v3835_v45 = vld [vmem:[#allocation8 + $0x334] sm:$0xf0] }
  0xff   :  { %2027 = vmatmul.bf16.vlgmr.msra.gmra.mxu0 %v4194_v41  ;;  %v1044_v52 = vadd.f32 %v1043_v48, %v1031_v44  ;;  %v3207_v40 = vor.u32 %v3789_v35, %v3204_v36  ;;  %v3188_v44 = vld [vmem:[#allocation8 + $0x1b8] sm:$0xf0]  ;;  %v3298_v48 = vld [vmem:[#allocation8 + $0x288] sm:$0xf] }
 0x100   :  { %2071 = vmatpush.bf16.msrb.mxu0 %v3095_v4  ;;  %v3391_v4 = vor.u32 %v3836_v55, %v3388_v56  ;;  %v3191_v47 = vor.u32 %v3785_v43, %v3188_v44  ;;  %v3811_v55 = vld [vmem:[#allocation8 + $0x274] sm:$0xf0]  ;;  %v3777_v56 = vld [vmem:[#allocation8 + $0x16c] sm:$0xf]  ;;  %v3458_v36 = vld [vmem:[#allocation8 + $0x3c8] sm:$0xf] }
 0x101   :  { %1988 = vmatmul.bf16.vlgmr.msrb.gmra.mxu1 %v4199_v1  ;;  %v3442_v43 = vld [vmem:[#allocation8 + $0x3a8] sm:$0xf]  ;;  %v3851_v44 = vld [vmem:[#allocation8 + $0x3b4] sm:$0xf0] }
 0x102   :  { %2036 = vmatpush.bf16.msra.mxu1 %v3155_v2  ;;  %2011 = vmatpush.bf16.msrb.mxu3 %v3391_v4  ;;  %v3815_v2 = vld [vmem:[#allocation8 + $0x294] sm:$0xf0]  ;;  %v3267_v4 = vor.u32 %v3807_v63, %v3266_v61  ;;  %v3268_v61 = vld [vmem:[#allocation8 + $0x258] sm:$0xf0] }
 0x104   :  { %2072 = vmatpush.bf16.msrb.mxu0 %v3079_v18  ;;  %v1032_v0 = vpop.f32.mrf.mxu0  ;;  %v3346_v18 = vld [vmem:[#allocation8 + $0x2e8] sm:$0xf] }
 0x105   :  { %v1045_v11 = vpop.f32.mrf.mxu1  ;;  %v3347_v30 = vor.u32 %v3827_v19, %v3346_v18  ;;  %v3234_v19 = vld [vmem:[#allocation8 + $0x208] sm:$0xf] }
 0x106   :  { %v1056_v3 = vpop.f32.mrf.mxu2  ;;  %2037 = vmatpush.bf16.msra.mxu1 %v3139_v58  ;;  %2012 = vmatpush.bf16.msrb.mxu3 %v3375_v20  ;;  %v3156_v58 = vld [vmem:[#allocation8 + $0x178] sm:$0xf0]  ;;  %v3803_v11 = vld [vmem:[#allocation8 + $0x234] sm:$0xf0] }
 0x107   :  { %v1057_v62 = vadd.f32 %v1056_v3, %v1044_v52  ;;  %v1069_v8 = vpop.f32.mrf.mxu3  ;;  %v3299_v52 = vor.u32 %v3815_v2, %v3298_v48  ;;  %v3159_v60 = vor.u32 %v3777_v56, %v3156_v58  ;;  %v3251_v17 = vor.u32 %v3803_v11, %v3250_v6  ;;  %v3799_v20 = vld [vmem:[#allocation8 + $0x214] sm:$0xf0]  ;;  %v3809_v56 = vld [vmem:[#allocation8 + $0x26c] sm:$0xf]  ;;  %v3284_v58 = vld [vmem:[#allocation8 + $0x278] sm:$0xf0] }
 0x108   :  { %2073 = vmatpush.bf16.msrb.mxu0 %v3063_v27  ;;  %v3443_v48 = vor.u32 %v3851_v44, %v3442_v43  ;;  %v3797_v11 = vld [vmem:[#allocation8 + $0x20c] sm:$0xf] }
 0x109   :  { %v1070_v12 = vadd.f32 %v1069_v8, %v1057_v62 }
 0x10a   :  { %2038 = vmatpush.bf16.msra.mxu1 %v3123_v10 }
 0x10b   :  { %v1127_v21 = vmul.f32 0.2, %v1070_v12 }
 0x10c   :  { %2074 = vmatpush.bf16.msrb.mxu0 %v3047_v37  ;;  %v3359_v37 = vor.u32 %v3828_v25, %v3356_v26  ;;  %v3859_v25 = vld [vmem:[#allocation8 + $0x3f4] sm:$0xf0]  ;;  %v3825_v26 = vld [vmem:[#allocation8 + $0x2ec] sm:$0xf] }
 0x10d   :  { %v1131_v27 = vmax.f32 %v1070_v12, %v1127_v21  ;;  %v3769_v12 = vld [vmem:[#allocation8 + $0x12c] sm:$0xf] }
 0x10e   :  { %v1058_v29 = vpop.f32.mrf.mxu2  ;;  %2039 = vmatpush.bf16.msra.mxu1 %v3107_v24  ;;  %2013 = vmatpush.bf16.msrb.mxu3 %v3359_v37  ;;  %v3765_v21 = vld [vmem:[#allocation8 + $0x10c] sm:$0xf]  ;;  %v3474_v24 = vld [vmem:[#allocation8 + $0x3e8] sm:$0xf] }
 0x10f   :  { %v4205_v33 = vpack.c.bf16 %v1131_v27, %v1131_v27  ;;  %v1071_v38 = vpop.f32.mrf.mxu3  ;;  %v3348_v27 = vld [vmem:[#allocation8 + $0x2f8] sm:$0xf0]  ;;  %v3475_v34 = vor.u32 %v3859_v25, %v3474_v24  ;;  %v3845_v24 = vld [vmem:[#allocation8 + $0x38c] sm:$0xf] }
 0x110   :  { %2075 = vmatpush.bf16.msrb.mxu0 %v3031_v49  ;;  %v3781_v49 = vld [vmem:[#allocation8 + $0x18c] sm:$0xf]  ;;  %v3351_v35 = vor.u32 %v3825_v26, %v3348_v27  ;;  %v3855_v38 = vld [vmem:[#allocation8 + $0x3d4] sm:$0xf0]  ;;  %v3428_v25 = vld [vmem:[#allocation8 + $0x398] sm:$0xf0] }
 0x111   :  { %1949 = vmatmul.bf16.vlgmr.msra.gmra.mxu2 %v4205_v33  ;;  %2040 = vmatmul.bf16.vlgmr.msra.gmra.mxu1 %v4199_v1  ;;  %v3175_v7 = vor.u32 %v3781_v49, %v3172_v50  ;;  %v3459_v9 = vor.u32 %v3855_v38, %v3458_v36  ;;  %v3426_v49 = vld [vmem:[#allocation8 + $0x388] sm:$0xf]  ;;  %v3847_v50 = vld [vmem:[#allocation8 + $0x394] sm:$0xf0]  ;;  %v3431_v27 = vor.u32 %v3845_v24, %v3428_v25 }
 0x112   :  { %2045 = vmatpush.bf16.msra.mxu2 %v3347_v30  ;;  %2084 = vmatpush.bf16.msrb.mxu1 %v3223_v31  ;;  %v3235_v30 = vor.u32 %v3799_v20, %v3234_v19  ;;  %v3111_v31 = vor.u32 %v3765_v21, %v3108_v23  ;;  %v3460_v19 = vld [vmem:[#allocation8 + $0x3d8] sm:$0xf0]  ;;  %v3849_v21 = vld [vmem:[#allocation8 + $0x3ac] sm:$0xf] }
 0x114   :  { %2076 = vmatpush.bf16.msrb.mxu0 %v3015_v59  ;;  %v3283_v59 = vor.u32 %v3811_v55, %v3282_v53  ;;  %v3843_v55 = vld [vmem:[#allocation8 + $0x374] sm:$0xf0] }
 0x116   :  { %2046 = vmatpush.bf16.msra.mxu2 %v3331_v39  ;;  %2085 = vmatpush.bf16.msrb.mxu1 %v3207_v40  ;;  %v3821_v39 = vld [vmem:[#allocation8 + $0x2cc] sm:$0xf]  ;;  %v3332_v40 = vld [vmem:[#allocation8 + $0x2d8] sm:$0xf0] }
 0x117   :  { %v3335_v42 = vor.u32 %v3821_v39, %v3332_v40  ;;  %v3829_v39 = vld [vmem:[#allocation8 + $0x30c] sm:$0xf]  ;;  %v3364_v40 = vld [vmem:[#allocation8 + $0x318] sm:$0xf0] }
 0x118   :  { %2077 = vmatpush.bf16.msrb.mxu0 %v2999_v13  ;;  %v3124_v13 = vld [vmem:[#allocation8 + $0x138] sm:$0xf0] }
 0x119   :  { %v3127_v18 = vor.u32 %v3769_v12, %v3124_v13  ;;  %v3236_v12 = vld [vmem:[#allocation8 + $0x218] sm:$0xf0]  ;;  %v3857_v13 = vld [vmem:[#allocation8 + $0x3ec] sm:$0xf] }
 0x11a   :  { %2047 = vmatpush.bf16.msra.mxu2 %v3315_v46  ;;  %2086 = vmatpush.bf16.msrb.mxu1 %v3191_v47  ;;  %v3817_v46 = vld [vmem:[#allocation8 + $0x2ac] sm:$0xf]  ;;  %v3316_v47 = vld [vmem:[#allocation8 + $0x2b8] sm:$0xf0] }
 0x11b   :  { %v3319_v2 = vor.u32 %v3817_v46, %v3316_v47 }
 0x11c   :  { %2078 = vmatpush.bf16.msrb.mxu0 %v2983_v28  ;;  %v1082_v54 = vpop.f32.mrf.mxu0 }
 0x11d   :  { %v1095_v3 = vpop.f32.mrf.mxu1 }
 0x11e   :  { %2048 = vmatpush.bf16.msra.mxu2 %v3299_v52  ;;  %2087 = vmatpush.bf16.msrb.mxu1 %v3175_v7  ;;  %v3300_v52 = vld [vmem:[#allocation8 + $0x298] sm:$0xf0]  ;;  %v3427_v7 = vor.u32 %v3847_v50, %v3426_v49  ;;  %v3866_v49 = vld [vmem:[#allocation11 + $0x30] sm:$0xff]  ;;  %v3865_v50 = vld [vmem:[#allocation11 + $0x28] sm:$0xff] }
 0x11f   :  { %2079 = vmatmul.bf16.vlgmr.msrb.gmra.mxu0 %v4194_v41  ;;  %v1083_v41 = vadd.f32 %v1082_v54, %v265_v51  ;;  %v3813_v51 = vld [vmem:[#allocation8 + $0x28c] sm:$0xf]  ;;  %v3410_v54 = vld [vmem:[#allocation8 + $0x368] sm:$0xf] }
 0x120   :  { %v3303_v53 = vor.u32 %v3813_v51, %v3300_v52  ;;  %v3864_v52 = vld [vmem:[#allocation11 + $0x20] sm:$0xff] }
 0x121   :  { %v1096_v62 = vadd.f32 %v1095_v3, %v1083_v41  ;;  %2001 = vmatmul.bf16.vlgmr.msrb.gmra.mxu2 %v4205_v33  ;;  %v3287_v41 = vor.u32 %v3809_v56, %v3284_v58  ;;  %v3394_v3 = vld [vmem:[#allocation8 + $0x348] sm:$0xf] }
 0x122   :  { %2049 = vmatpush.bf16.msra.mxu2 %v3283_v59  ;;  %2088 = vmatpush.bf16.msrb.mxu1 %v3159_v60  ;;  %v3839_v59 = vld [vmem:[#allocation8 + $0x354] sm:$0xf0]  ;;  %v3805_v60 = vld [vmem:[#allocation8 + $0x24c] sm:$0xf] }
 0x123   :  { %v3271_v63 = vor.u32 %v3805_v60, %v3268_v61  ;;  %v3872_v60 = vld [vmem:[#allocation11 + $0x60] sm:$0xff] }
 0x124   :  { %v1084_v10 = vpop.f32.mrf.mxu0 }
 0x125   :  { %v1108_v0 = vpop.f32.mrf.mxu2  ;;  %v1097_v14 = vpop.f32.mrf.mxu1  ;;  %v3831_v10 = vld [vmem:[#allocation8 + $0x314] sm:$0xf0] }
 0x126   :  { %v1109_v8 = vadd.f32 %v1108_v0, %v1096_v62  ;;  %2050 = vmatpush.bf16.msra.mxu2 %v3267_v4  ;;  %2089 = vmatpush.bf16.msrb.mxu1 %v3143_v5  ;;  %v3395_v62 = vor.u32 %v3839_v59, %v3394_v3  ;;  %v3801_v0 = vld [vmem:[#allocation8 + $0x22c] sm:$0xf]  ;;  %v3252_v4 = vld [vmem:[#allocation8 + $0x238] sm:$0xf0]  ;;  %v3379_v5 = vor.u32 %v3835_v45, %v3378_v57  ;;  %v3860_v59 = vld [vmem:[#allocation11] sm:$0xff] }
 0x127   :  { %v1121_v15 = vpop.f32.mrf.mxu3  ;;  %v3255_v6 = vor.u32 %v3801_v0, %v3252_v4  ;;  %v3476_v14 = vld [vmem:[#allocation8 + $0x3f8] sm:$0xf0]  ;;  %v3870_v0 = vld [vmem:[#allocation11 + $0x50] sm:$0xff] }
 0x128   :  { %v1122_v16 = vadd.f32 %v1121_v15, %v1109_v8  ;;  %v3362_v8 = vld [vmem:[#allocation8 + $0x308] sm:$0xf]  ;;  %v3883_v57 = vld [vmem:[#allocation11 + $0xb8] sm:$0xff]  ;;  %v3882_v4 = vld [vmem:[#allocation11 + $0xb0] sm:$0xff] }
 0x129   :  { %v3363_v15 = vor.u32 %v3831_v10, %v3362_v8  ;;  %v4233_v8 = vld [vmem:[#allocation10] sm:$0xf] }
 0x12a   :  { %v1128_v22 = vmul.f32 0.2, %v1122_v16  ;;  %2051 = vmatpush.bf16.msra.mxu2 %v3251_v17  ;;  %2090 = vmatpush.bf16.msrb.mxu1 %v3127_v18  ;;  %v3479_v17 = vor.u32 %v3857_v13, %v3476_v14  ;;  %v3853_v18 = vld [vmem:[#allocation8 + $0x3cc] sm:$0xf]  ;;  %v1267_v13 = vperm.slane %v4233_v8, 0  ;;  %v3879_v14 = vld [vmem:[#allocation11 + $0x98] sm:$0xff] }
 0x12b   :  { %v3463_v20 = vor.u32 %v3853_v18, %v3460_v19 }
 0x12c   :  { %v1132_v28 = vmax.f32 %v1122_v16, %v1128_v22  ;;  %v3239_v16 = vor.u32 %v3797_v11, %v3236_v12  ;;  %v3444_v22 = vld [vmem:[#allocation8 + $0x3b8] sm:$0xf0]  ;;  %v3868_v11 = vld [vmem:[#allocation11 + $0x40] sm:$0xff] }
 0x12d   :  { %v1110_v29 = vpop.f32.mrf.mxu2  ;;  %v3447_v23 = vor.u32 %v3849_v21, %v3444_v22  ;;  %v3880_v12 = vld [vmem:[#allocation11 + $0xa0] sm:$0xff] }
 0x12e   :  { %v4212_v32 = vpack.c.bf16 %v1132_v28, %v1132_v28  ;;  %2052 = vmatpush.bf16.msra.mxu2 %v3235_v30  ;;  %2091 = vmatpush.bf16.msrb.mxu1 %v3111_v31  ;;  %v3841_v28 = vld [vmem:[#allocation8 + $0x36c] sm:$0xf]  ;;  %v3412_v29 = vld [vmem:[#allocation8 + $0x378] sm:$0xf0] }
 0x12f   :  { %v1123_v37 = vpop.f32.mrf.mxu3  ;;  %v3415_v30 = vor.u32 %v3841_v28, %v3412_v29  ;;  %v3837_v31 = vld [vmem:[#allocation8 + $0x34c] sm:$0xf]  ;;  %v3876_v29 = vld [vmem:[#allocation11 + $0x80] sm:$0xff] }
 0x130   :  { %1962 = vmatmul.bf16.vlgmr.msra.gmra.mxu3 %v4212_v32  ;;  %v3380_v37 = vld [vmem:[#allocation8 + $0x338] sm:$0xf0] }
 0x131   :  { %2058 = vmatpush.bf16.msra.mxu3 %v3475_v34  ;;  %2092 = vmatmul.bf16.vlgmr.msrb.gmra.mxu1 %v4199_v1  ;;  %v3411_v1 = vor.u32 %v3843_v55, %v3410_v54  ;;  %v3396_v34 = vld [vmem:[#allocation8 + $0x358] sm:$0xf0]  ;;  %v3862_v54 = vld [vmem:[#allocation11 + $0x10] sm:$0xff] }
 0x132   :  { %2097 = vmatpush.bf16.msrb.mxu2 %v3351_v35  ;;  %v3399_v36 = vor.u32 %v3837_v31, %v3396_v34  ;;  %v3874_v55 = vld [vmem:[#allocation11 + $0x70] sm:$0xff]  ;;  %v1268_v31 = vperm.slane %v4233_v8, 1 }
 0x133   :  { %2053 = vmatmul.bf16.vlgmr.msra.gmra.mxu2 %v4205_v33 }
 0x135   :  { %2059 = vmatpush.bf16.msra.mxu3 %v3459_v9 }
 0x136   :  { %2098 = vmatpush.bf16.msrb.mxu2 %v3335_v42  ;;  %v3367_v42 = vor.u32 %v3829_v39, %v3364_v40 }
 0x139   :  { %2060 = vmatpush.bf16.msra.mxu3 %v3443_v48  ;;  %v3867_v48 = vld [vmem:[#allocation11 + $0x38] sm:$0xff] }
 0x13a   :  { %2099 = vmatpush.bf16.msrb.mxu2 %v3319_v2  ;;  %2395 = vmatpush.bf16.msra.mxu0 %v3867_v48 }
 0x13d   :  { %2061 = vmatpush.bf16.msra.mxu3 %v3427_v7  ;;  %v3875_v7 = vld [vmem:[#allocation11 + $0x78] sm:$0xff] }
 0x13e   :  { %2100 = vmatpush.bf16.msrb.mxu2 %v3303_v53  ;;  %2396 = vmatpush.bf16.msra.mxu0 %v3866_v49  ;;  %v3863_v53 = vld [vmem:[#allocation11 + $0x18] sm:$0xff]  ;;  %v1269_v49 = vperm.slane %v4233_v8, 2 }
 0x13f   :  { %2408 = vmatpush.bf16.msra.mxu1 %v3875_v7  ;;  %v3885_v7 = vld [vmem:[#allocation11 + $0xc8] sm:$0xff] }
 0x140   :  { %2014 = vmatmul.bf16.vlgmr.msrb.gmra.mxu3 %v4212_v32 }
 0x141   :  { %2062 = vmatpush.bf16.msra.mxu3 %v3411_v1  ;;  %v3861_v1 = vld [vmem:[#allocation11 + $0x8] sm:$0xff] }
 0x142   :  { %2101 = vmatpush.bf16.msrb.mxu2 %v3287_v41  ;;  %2397 = vmatpush.bf16.msra.mxu0 %v3865_v50  ;;  %v3873_v41 = vld [vmem:[#allocation11 + $0x68] sm:$0xff] }
 0x143   :  { %2409 = vmatpush.bf16.msra.mxu1 %v3874_v55 }
 0x145   :  { %2063 = vmatpush.bf16.msra.mxu3 %v3395_v62 }
 0x146   :  { %2102 = vmatpush.bf16.msrb.mxu2 %v3271_v63  ;;  %2398 = vmatpush.bf16.msra.mxu0 %v3864_v52  ;;  %v3871_v63 = vld [vmem:[#allocation11 + $0x58] sm:$0xff] }
 0x147   :  { %2410 = vmatpush.bf16.msra.mxu1 %v3873_v41 }
 0x149   :  { %2064 = vmatpush.bf16.msra.mxu3 %v3379_v5  ;;  %v3869_v5 = vld [vmem:[#allocation11 + $0x48] sm:$0xff] }
 0x14a   :  { %2103 = vmatpush.bf16.msrb.mxu2 %v3255_v6  ;;  %2399 = vmatpush.bf16.msra.mxu0 %v3863_v53  ;;  %v3881_v6 = vld [vmem:[#allocation11 + $0xa8] sm:$0xff] }
 0x14b   :  { %2411 = vmatpush.bf16.msra.mxu1 %v3872_v60 }
 0x14d   :  { %2065 = vmatpush.bf16.msra.mxu3 %v3363_v15 }
 0x14e   :  { %2104 = vmatpush.bf16.msrb.mxu2 %v3239_v16  ;;  %v4220_v26 = vpop.f32.mrf.mxu0  ;;  %2400 = vmatpush.bf16.msra.mxu0 %v3862_v54 }
 0x14f   :  { %2412 = vmatpush.bf16.msra.mxu1 %v3871_v63  ;;  %v1925_v15 = vadd.f32 %v4220_v26, %v1267_v13 }
 0x150   :  { %2066 = vmatmul.bf16.vlgmr.msra.gmra.mxu3 %v4212_v32 }
 0x151   :  { %2110 = vmatpush.bf16.msrb.mxu3 %v3479_v17  ;;  %2105 = vmatmul.bf16.vlgmr.msrb.gmra.mxu2 %v4205_v33  ;;  %v3833_v33 = vld [vmem:[#allocation8 + $0x32c] sm:$0xf]  ;;  %v3878_v17 = vld [vmem:[#allocation11 + $0x90] sm:$0xff] }
 0x152   :  { %v3383_v38 = vor.u32 %v3833_v33, %v3380_v37  ;;  %2401 = vmatpush.bf16.msra.mxu0 %v3861_v1  ;;  %2421 = vmatpush.bf16.msra.mxu2 %v3883_v57  ;;  %v3889_v37 = vld [vmem:[#allocation11 + $0xe8] sm:$0xff]  ;;  %v3884_v1 = vld [vmem:[#allocation11 + $0xc0] sm:$0xff] }
 0x153   :  { %2413 = vmatpush.bf16.msra.mxu1 %v3870_v0 }
 0x155   :  { %2111 = vmatpush.bf16.msrb.mxu3 %v3463_v20 }
 0x156   :  { %v1926_v35 = vpop.f32.mrf.mxu0  ;;  %2402 = vmatpush.bf16.msra.mxu0 %v3860_v59  ;;  %2422 = vmatpush.bf16.msra.mxu2 %v3882_v4 }
 0x157   :  { %2414 = vmatpush.bf16.msra.mxu1 %v3869_v5  ;;  %v3890_v35 = vld [vmem:[#allocation11 + $0xf0] sm:$0xff] }
 0x159   :  { %2112 = vmatpush.bf16.msrb.mxu3 %v3447_v23  ;;  %v3877_v23 = vld [vmem:[#allocation11 + $0x88] sm:$0xff] }
 0x15a   :  { %2423 = vmatpush.bf16.msra.mxu2 %v3881_v6 }
 0x15b   :  { %2415 = vmatpush.bf16.msra.mxu1 %v3868_v11 }
 0x15d   :  { %2113 = vmatpush.bf16.msrb.mxu3 %v3431_v27 }
 0x15e   :  { %v4222_v9 = vpop.f32.mrf.mxu0  ;;  %2424 = vmatpush.bf16.msra.mxu2 %v3880_v12 }
 0x161   :  { %2114 = vmatpush.bf16.msrb.mxu3 %v3415_v30  ;;  %v3891_v30 = vld [vmem:[#allocation11 + $0xf8] sm:$0xff] }
 0x162   :  { %2425 = vmatpush.bf16.msra.mxu2 %v3879_v14 }
 0x165   :  { %2115 = vmatpush.bf16.msrb.mxu3 %v3399_v36  ;;  %v1977_v36 = vadd.f32 %v4222_v9, %v1268_v31  ;;  %v3886_v9 = vld [vmem:[#allocation11 + $0xd0] sm:$0xff] }
 0x166   :  { %v1978_v43 = vpop.f32.mrf.mxu0  ;;  %2426 = vmatpush.bf16.msra.mxu2 %v3878_v17 }
 0x169   :  { %2116 = vmatpush.bf16.msrb.mxu3 %v3383_v38 }
 0x16a   :  { %2427 = vmatpush.bf16.msra.mxu2 %v3877_v23 }
 0x16d   :  { %2117 = vmatpush.bf16.msrb.mxu3 %v3367_v42  ;;  %v3888_v42 = vld [vmem:[#allocation11 + $0xe0] sm:$0xff] }
 0x16e   :  { %v1937_v44 = vpop.f32.mrf.mxu1  ;;  %2428 = vmatpush.bf16.msra.mxu2 %v3876_v29 }
 0x16f   :  { %v1938_v18 = vadd.f32 %v1937_v44, %v1925_v15 }
 0x170   :  { %2118 = vmatmul.bf16.vlgmr.msrb.gmra.mxu3 %v4212_v32 }
 0x171   :  { %2434 = vmatpush.bf16.msra.mxu3 %v3891_v30 }
 0x175   :  { %2435 = vmatpush.bf16.msra.mxu3 %v3890_v35 }
 0x176   :  { %v1939_v47 = vpop.f32.mrf.mxu1 }
 0x177   :  { %v3887_v47 = vld [vmem:[#allocation11 + $0xd8] sm:$0xff] }
 0x179   :  { %2436 = vmatpush.bf16.msra.mxu3 %v3889_v37 }
 0x17c   :  { %v4225_v46 = vpop.f32.mrf.mxu0 }
 0x17d   :  { %2437 = vmatpush.bf16.msra.mxu3 %v3888_v42  ;;  %v2029_v52 = vadd.f32 %v4225_v46, %v1269_v49 }
 0x17e   :  { %v4227_v51 = vpop.f32.mrf.mxu1 }
 0x17f   :  { %v1990_v38 = vadd.f32 %v4227_v51, %v1977_v36 }
 0x181   :  { %2438 = vmatpush.bf16.msra.mxu3 %v3887_v47 }
 0x184   :  { %v2030_v2 = vpop.f32.mrf.mxu0 }
 0x185   :  { %2439 = vmatpush.bf16.msra.mxu3 %v3886_v9 }
 0x186   :  { %v1991_v32 = vpop.f32.mrf.mxu1 }
 0x189   :  { %2440 = vmatpush.bf16.msra.mxu3 %v3885_v7 }
 0x18d   :  { %2441 = vmatpush.bf16.msra.mxu3 %v3884_v1 }
 0x18e   :  { %v4229_v56 = vpop.f32.mrf.mxu1 }
 0x18f   :  { %v2042_v51 = vadd.f32 %v4229_v56, %v2029_v52 }
 0x194   :  { %v1950_v3 = vpop.f32.mrf.mxu2 }
 0x195   :  { %v1951_v20 = vadd.f32 %v1950_v3, %v1938_v18 }
 0x196   :  { %v2043_v61 = vpop.f32.mrf.mxu1 }
 0x19c   :  { %v4231_v58 = vpop.f32.mrf.mxu0  ;;  %v1952_v45 = vpop.f32.mrf.mxu2 }
 0x1a4   :  { %v2082_v62 = vpop.f32.mrf.mxu0  ;;  %v2002_v10 = vpop.f32.mrf.mxu2 }
 0x1a5   :  { %v2003_v39 = vadd.f32 %v2002_v10, %v1990_v38  ;;  %v1270_v62 = vperm.slane %v4233_v8, 3  ;;  %v3903_v8 = vld [vmem:[%s4257_s6] ss:$0 sm:$0xff] }
 0x1a7   :  { %v2081_v46 = vadd.f32 %v4231_v58, %v1270_v62 }
 0x1ac   :  { %v2004_v16 = vpop.f32.mrf.mxu2 }
 0x1ae   :  { %v2093_v19 = vpop.f32.mrf.mxu1 }
 0x1af   :  { %v2094_v63 = vadd.f32 %v2093_v19, %v2081_v46 }
 0x1b3   :  { %v1963_v21 = vpop.f32.mrf.mxu3 }
 0x1b4   :  { %v1964_v22 = vadd.f32 %v1963_v21, %v1951_v20 }
 0x1b6   :  { %v2123_v24 = vmul.f32 0.2, %v1964_v22  ;;  %v2054_v25 = vpop.f32.mrf.mxu2  ;;  %v2095_v28 = vpop.f32.mrf.mxu1 }
 0x1b7   :  { %v2055_v53 = vadd.f32 %v2054_v25, %v2042_v51 }
 0x1b8   :  { %v2127_v27 = vmax.f32 %v1964_v22, %v2123_v24 }
 0x1ba   :  { %v2131_v26 = vpack.c.bf16 %v2127_v27, %v2127_v27 }
 0x1bb   :  { %v1965_v34 = vpop.f32.mrf.mxu3 }
 0x1bc   :  { %2403 = vmatmul.bf16.vlgmr.msra.gmra.mxu0 %v2131_v26 }
 0x1be   :  { %v2056_v33 = vpop.f32.mrf.mxu2 }
 0x1c3   :  { %v2015_v40 = vpop.f32.mrf.mxu3 }
 0x1c4   :  { %v2016_v43 = vadd.f32 %v2015_v40, %v2003_v39 }
 0x1c6   :  { %v2124_v44 = vmul.f32 0.2, %v2016_v43 }
 0x1c8   :  { %v2128_v48 = vmax.f32 %v2016_v43, %v2124_v44 }
 0x1ca   :  { %v2132_v2 = vpack.c.bf16 %v2128_v48, %v2128_v48 }
 0x1cb   :  { %v2017_v50 = vpop.f32.mrf.mxu3 }
 0x1cc   :  { %2416 = vmatmul.bf16.vlgmr.msra.gmra.mxu1 %v2132_v2 }
 0x1d3   :  { %v2067_v54 = vpop.f32.mrf.mxu3 }
 0x1d4   :  { %v2106_v32 = vpop.f32.mrf.mxu2  ;;  %v2068_v55 = vadd.f32 %v2067_v54, %v2055_v53 }
 0x1d5   :  { %v2107_v56 = vadd.f32 %v2106_v32, %v2094_v63 }
 0x1d6   :  { %v2125_v41 = vmul.f32 0.2, %v2068_v55 }
 0x1d8   :  { %v2129_v3 = vmax.f32 %v2068_v55, %v2125_v41 }
 0x1da   :  { %v2133_v59 = vpack.c.bf16 %v2129_v3, %v2129_v3 }
 0x1db   :  { %v2069_v61 = vpop.f32.mrf.mxu3 }
 0x1dc   :  { %v2108_v60 = vpop.f32.mrf.mxu2  ;;  %2429 = vmatmul.bf16.vlgmr.msra.gmra.mxu2 %v2133_v59 }
 0x1f3   :  { %v2119_v57 = vpop.f32.mrf.mxu3 }
 0x1f4   :  { %v2120_v45 = vadd.f32 %v2119_v57, %v2107_v56 }
 0x1f6   :  { %v2126_v0 = vmul.f32 0.2, %v2120_v45 }
 0x1f8   :  { %v2130_v4 = vmax.f32 %v2120_v45, %v2126_v0 }
 0x1fa   :  { %v2134_v5 = vpack.c.bf16 %v2130_v4, %v2130_v4 }
 0x1fb   :  { %v2121_v6 = vpop.f32.mrf.mxu3 }
 0x1fc   :  { %2442 = vmatmul.bf16.vlgmr.msra.gmra.mxu3 %v2134_v5 }
 0x239   :  { %v2404_v10 = vpop.f32.mrf.mxu0 }
 0x23a   :  { %v2405_v58 = vadd.f32 %v3903_v8, %v2404_v10 }
 0x241   :  { %v2406_v11 = vpop.f32.mrf.mxu0 }
 0x249   :  { %v2417_v12 = vpop.f32.mrf.mxu1 }
 0x24a   :  { %v2418_v16 = vadd.f32 %v2417_v12, %v2405_v58 }
 0x251   :  { %v2419_v13 = vpop.f32.mrf.mxu1 }
 0x25f   :  { %v2430_v14 = vpop.f32.mrf.mxu2 }
 0x260   :  { %v2431_v17 = vadd.f32 %v2430_v14, %v2418_v16 }
 0x267   :  { %v2432_v15 = vpop.f32.mrf.mxu2 }
 0x27f   :  { %v2443_v18 = vpop.f32.mrf.mxu3 }
 0x280   :  { %v2444_v19 = vadd.f32 %v2443_v18, %v2431_v17 }
 0x282   :  { %2447 = vst [vmem:[#allocation13] sm:$0xf] %v2444_v19 }
 0x283   :  { %2458 = dma.vmem_to_hbm [thread:$0]  %s2454_s9, 64, %s2456_s12, [#allocation4]  }
 0x287   :  { %v2445_v20 = vpop.f32.mrf.mxu3 }
 0x288   :  { %4080 = dma.done.wait [#allocation4], 64  }
 0x289   :  { %4081 = vsyncadd [#allocation4], 4294967232 }
 0x28a   :  { %2463 = vsyncpa [#allocation3], 1 }
 0x28b   :  { %2464 = vsyncpa [#allocation6], 1 }
 0x28c   :  { %2465 = vsyncpa [#allocation9], 1 }
 0x28d   :  { %2466 = vsyncpa [#allocation12], 1 }
 0x28e   :  { %2467 = vsyncpa [#allocation4], 1 }

</bundles_post_ra>
